<compile_context>
chip_gen: v7x
topology: tpu7x:2x2x1
jax: 0.10.0
libtpu: 0.0.40
codegen_flags: <defaults>
</compile_context>

<pallas_src>
import functools
import math

import jax
import jax.numpy as jnp
from jax.experimental import pallas as pl
from jax.experimental.pallas import tpu as pltpu


# ------------------------- in-kernel helpers -------------------------

def _layernorm(x, gamma, beta, eps=1e-5):
    # PyTorch nn.LayerNorm over the last dim (biased variance, eps=1e-5), in f32.
    mean = jnp.mean(x, axis=-1, keepdims=True)
    var = jnp.mean((x - mean) ** 2, axis=-1, keepdims=True)
    return (x - mean) * jax.lax.rsqrt(var + eps) * gamma + beta


def encoder_layer_kernel(n_heads, d_k,
                         xq_ref, xkv_ref,
                         wq_ref, bq_ref, wkv_ref, bkv_ref,
                         wo_ref, bo_ref,
                         g1_ref, be1_ref,
                         w1_ref, b1_ref, w2_ref, b2_ref,
                         g2_ref, be2_ref,
                         o_ref,
                         k_scr, v_scr):
    qi = pl.program_id(1)
    cdtype = wq_ref.dtype          # compute dtype for MXU operands (f32 or bf16)
    H = n_heads

    x_res = xq_ref[0]              # (tq, D) f32 — query rows / residual for this tile
    tq, D = x_res.shape
    S = xkv_ref.shape[1]

    # ---- K/V projection: once per batch (qi == 0), persisted in VMEM scratch ----
    @pl.when(qi == 0)
    def _():
        x_kv = xkv_ref[0].astype(cdtype)                                   # (S, D)
        kv = jnp.dot(x_kv, wkv_ref[...],
                     preferred_element_type=jnp.float32) + bkv_ref[...]    # (S, 2D) f32
        k = jnp.transpose(kv[:, :D].reshape(S, H, d_k), (1, 0, 2))         # (H, S, d_k)
        v = jnp.transpose(kv[:, D:].reshape(S, H, d_k), (1, 0, 2))         # (H, S, d_k)
        k_scr[...] = k.astype(k_scr.dtype)
        v_scr[...] = v.astype(v_scr.dtype)

    # ---- Q projection for this tile (1/sqrt(d_k) pre-folded into wq/bq) ----
    q = jnp.dot(x_res.astype(cdtype), wq_ref[...],
                preferred_element_type=jnp.float32) + bq_ref[...]          # (tq, D) f32
    qh = jnp.transpose(q.reshape(tq, H, d_k), (1, 0, 2)).astype(cdtype)    # (H, tq, d_k)

    # ---- head-batched attention; single live (H, tq, S) softmax buffer ----
    s = jnp.einsum('hqd,hkd->hqk', qh, k_scr[...],
                   preferred_element_type=jnp.float32)                     # (H, tq, S)
    s = s - jnp.max(s, axis=-1, keepdims=True)
    s = jnp.exp(s)
    # NOTE: approx reciprocal (EUP) — tiny deviation from exact softmax.
    s = s * pl.reciprocal(jnp.sum(s, axis=-1, keepdims=True), approx=True)
    ctx = jnp.einsum('hqk,hkd->hqd', s.astype(cdtype), v_scr[...],
                     preferred_element_type=jnp.float32)                   # (H, tq, d_k)

    # ---- output projection: merge heads -> single K=D matmul against (D, D) Wo ----
    ctx = jnp.transpose(ctx, (1, 0, 2)).reshape(tq, D).astype(cdtype)      # (tq, D)
    attn = jnp.dot(ctx, wo_ref[...],
                   preferred_element_type=jnp.float32) + bo_ref[...]       # (tq, D) f32

    # ---- Add & Norm 1 (f32) ----
    out1 = _layernorm(attn + x_res, g1_ref[...], be1_ref[...])

    # ---- Position-wise FFN (f32 accumulation) ----
    # TODO(synk): tile over dff with an f32 VMEM accumulator for v7x production sizes.
    h = jnp.dot(out1.astype(cdtype), w1_ref[...],
                preferred_element_type=jnp.float32) + b1_ref[...]
    h = jnp.maximum(h, 0.0)
    h = jnp.dot(h.astype(cdtype), w2_ref[...],
                preferred_element_type=jnp.float32) + b2_ref[...]

    # ---- Add & Norm 2 (f32) ----
    out2 = _layernorm(h + out1, g2_ref[...], be2_ref[...])
    o_ref[0] = out2.astype(o_ref.dtype)


# ------------------------- host-side wrapper -------------------------

_WEIGHT_ORDER = ['wq', 'bq', 'wkv', 'bkv', 'wo', 'bo',
                 'g1', 'be1', 'w1', 'b1', 'w2', 'b2', 'g2', 'be2']


def _pick_tq(S):
    """MXU-friendly query tiles: prefer 256/128 rows; tiny/odd S -> one full tile."""
    for cand in (256, 128):
        if S >= cand and S % cand == 0:
            return cand
    return S


def _usable_vmem_bytes():
    """Generation-aware VMEM budget: physical capacity minus ~20% headroom."""
    cap = 128 * 1024 * 1024
    try:
        info = pltpu.get_tpu_info()
        cap = int(getattr(info, 'vmem_capacity_bytes', cap))
    except Exception:
        pass
    return int(cap * 4 // 5)      # ~102 MiB on v5e/v6e, ~51 MiB on v7x


def _vmem_limit_bytes(S, tq, D, dff, n_heads, compute_dtype):
    """Tiled working-set estimate (+25% headroom), clamped to the usable budget."""
    wi = jnp.dtype(compute_dtype).itemsize
    f32 = 4
    weights = (4 * D * D + 2 * D * dff) * wi + (9 * D + dff) * f32   # single-buffered
    acts = 2 * (2 * tq * D + S * D) * f32                            # double-buffered xq/out/xkv
    scratch = 2 * S * D * wi                                         # persistent K/V scratch
    temps = (2 * S * D + n_heads * tq * S + tq * dff + 8 * tq * D) * f32
    est = int((weights + acts + scratch + temps) * 1.25)
    usable = _usable_vmem_bytes()
    return min(max(est, 16 * 1024 * 1024), usable)


def _weight_spec(shape, ndim, single_buffer):
    index_map = lambda b, qi, _n=ndim: (0,) * _n   # grid-constant -> fetched once
    if single_buffer:
        return pl.BlockSpec(shape, index_map, pipeline_mode=pl.Buffered(1))
    return pl.BlockSpec(shape, index_map)


def _encoder_layer_call(x, params, n_heads, d_k, single_buffer_weights):
    B, S, D = x.shape
    dff = params['w1'].shape[1]
    cdtype = params['wq'].dtype
    tq = _pick_tq(S)
    n_qt = S // tq

    # x is passed twice: once tiled over query rows, once full-sequence for K/V
    # (the full-S block's index only changes with b, so it is DMA'd once per batch).
    args = [x, x]
    in_specs = [
        pl.BlockSpec((1, tq, D), lambda b, qi: (b, qi, 0)),
        pl.BlockSpec((1, S, D), lambda b, qi: (b, 0, 0)),
    ]
    for name in _WEIGHT_ORDER:
        w = params[name]
        in_specs.append(_weight_spec(w.shape, w.ndim, single_buffer_weights))
        args.append(w)

    kernel = functools.partial(encoder_layer_kernel, n_heads, d_k)
    return pl.pallas_call(
        kernel,
        out_shape=jax.ShapeDtypeStruct((B, S, D), x.dtype),
        grid=(B, n_qt),
        in_specs=in_specs,
        out_specs=pl.BlockSpec((1, tq, D), lambda b, qi: (b, qi, 0)),
        scratch_shapes=[pltpu.VMEM((n_heads, S, d_k), cdtype),   # K (persists over qi)
                        pltpu.VMEM((n_heads, S, d_k), cdtype)],  # V (persists over qi)
        compiler_params=pltpu.CompilerParams(
            dimension_semantics=("parallel", "arbitrary"),
            vmem_limit_bytes=_vmem_limit_bytes(S, tq, D, dff, n_heads, cdtype)),
    )(*args)


def encoder_layer(x, params, n_heads, d_k):
    try:
        return _encoder_layer_call(x, params, n_heads, d_k, single_buffer_weights=True)
    except Exception:
        # Fallback for environments where single-buffered weights (pl.Buffered(1))
        # are not accepted by the TPU pipeliner; default double-buffering still works.
        return _encoder_layer_call(x, params, n_heads, d_k, single_buffer_weights=False)


def positional_encoding_table(d_hid, seq_len):
    """Sin/cos positional encoding, length derived from the actual sequence."""
    assert d_hid % 2 == 0, "positional encoding assumes even d_model"
    pos = jnp.arange(seq_len, dtype=jnp.float32).reshape(-1, 1)
    div = jnp.power(10000.0,
                    jnp.arange(0, d_hid, 2, dtype=jnp.float32) / d_hid)
    X = pos / div
    P = jnp.zeros((1, seq_len, d_hid), jnp.float32)
    P = P.at[:, :, 0::2].set(jnp.sin(X))
    P = P.at[:, :, 1::2].set(jnp.cos(X))
    return P


def init_encoder_params(key, d_model, n_layers):
    """PyTorch-style init (uniform +/- 1/sqrt(fan_in)) in PyTorch layout (unfused)."""
    dff = d_model * 4

    def linear(k, fan_in, fan_out):
        k1, k2 = jax.random.split(k)
        bound = 1.0 / math.sqrt(fan_in)
        w = jax.random.uniform(k1, (fan_in, fan_out), jnp.float32, -bound, bound)
        b = jax.random.uniform(k2, (1, fan_out), jnp.float32, -bound, bound)
        return w, b

    layers = []
    for _ in range(n_layers):
        key, *ks = jax.random.split(key, 7)
        wq, bq = linear(ks[0], d_model, d_model)
        wk, bk = linear(ks[1], d_model, d_model)
        wv, bv = linear(ks[2], d_model, d_model)
        wo, bo = linear(ks[3], d_model, d_model)
        w1, b1 = linear(ks[4], d_model, dff)
        w2, b2 = linear(ks[5], dff, d_model)
        layers.append(dict(
            wq=wq, bq=bq, wk=wk, bk=bk, wv=wv, bv=bv, wo=wo, bo=bo,
            w1=w1, b1=b1, w2=w2, b2=b2,
            g1=jnp.ones((1, d_model), jnp.float32),
            be1=jnp.zeros((1, d_model), jnp.float32),
            g2=jnp.ones((1, d_model), jnp.float32),
            be2=jnp.zeros((1, d_model), jnp.float32),
        ))
    return layers


def prepare_layer_params(p, n_heads, compute_dtype=jnp.float32):
    """One-time host-side weight prep:
       * 1/sqrt(d_k) folded into Wq/bq (no in-kernel scale multiply),
       * Wk|Wv fused into one (D, 2D) weight (single wide K/V matmul),
       * matmul weights cast to compute_dtype (bf16 on v6e/v7x); biases/LN stay f32."""
    D = p['wq'].shape[0]
    d_k = D // n_heads
    scale = 1.0 / math.sqrt(d_k)
    wdt = compute_dtype
    return dict(
        wq=(p['wq'] * scale).astype(wdt),
        bq=p['bq'] * scale,
        wkv=jnp.concatenate([p['wk'], p['wv']], axis=1).astype(wdt),
        bkv=jnp.concatenate([p['bk'], p['bv']], axis=1),
        wo=p['wo'].astype(wdt), bo=p['bo'],
        g1=p['g1'], be1=p['be1'],
        w1=p['w1'].astype(wdt), b1=p['b1'],
        w2=p['w2'].astype(wdt), b2=p['b2'],
        g2=p['g2'], be2=p['be2'],
    )


def encoder_forward(x, layer_params, n_heads, compute_dtype=jnp.float32):
    """x: (B, S, D) -> (B, S, D).  attn_type != 'ATA' path (scaled-dot softmax)."""
    B, S, D = x.shape
    d_k = D // n_heads
    x = x + positional_encoding_table(D, S)        # elementwise glue, plain JAX
    prepared = [prepare_layer_params(p, n_heads, compute_dtype) for p in layer_params]
    # TODO(synk): prefetch layer l+1 weights during layer l via cross-call DMA futures
    #   (P10), or fold all layers into one pallas_call with a layer grid axis.
    for p in prepared:
        x = encoder_layer(x, p, n_heads, d_k)
    return x


# ------------------------- pure-JAX reference (PyTorch semantics) -------------------------

def _layernorm_ref(x, gamma, beta, eps=1e-5):
    mean = jnp.mean(x, axis=-1, keepdims=True)
    var = jnp.mean((x - mean) ** 2, axis=-1, keepdims=True)
    return (x - mean) / jnp.sqrt(var + eps) * gamma + beta


def encoder_forward_ref(x, layer_params, n_heads):
    B, S, D = x.shape
    d_k = D // n_heads
    x = x + positional_encoding_table(D, S)
    for p in layer_params:
        q = x @ p['wq'] + p['bq'][0]
        k = x @ p['wk'] + p['bk'][0]
        v = x @ p['wv'] + p['bv'][0]

        def split(t):
            return t.reshape(B, S, n_heads, d_k).transpose(0, 2, 1, 3)

        qh, kh, vh = split(q), split(k), split(v)
        s = jnp.einsum('bhqd,bhkd->bhqk', qh, kh) / math.sqrt(d_k)
        a = jax.nn.softmax(s, axis=-1)
        ctx = jnp.einsum('bhqk,bhkd->bhqd', a, vh)
        ctx = ctx.transpose(0, 2, 1, 3).reshape(B, S, D)
        attn_out = ctx @ p['wo'] + p['bo'][0]
        out1 = _layernorm_ref(attn_out + x, p['g1'][0], p['be1'][0])
        h = jax.nn.relu(out1 @ p['w1'] + p['b1'][0])
        h2 = h @ p['w2'] + p['b2'][0]
        x = _layernorm_ref(h2 + out1, p['g2'][0], p['be2'][0])
    return x


# ------------------------- demo -------------------------

if __name__ == "__main__":
    B, S, D = 2, 8, 32
    n_heads, n_layers = 4, 2

    key = jax.random.PRNGKey(0)
    k_in, k_par = jax.random.split(key)
    enc_input = jax.random.normal(k_in, (B, S, D), jnp.float32)
    layer_params = init_encoder_params(k_par, D, n_layers)

    ref = jax.block_until_ready(encoder_forward_ref(enc_input, layer_params, n_heads))

    # f32 path: close parity with the PyTorch/pure-JAX reference.
    out_f32 = jax.block_until_ready(
        encoder_forward(enc_input, layer_params, n_heads, compute_dtype=jnp.float32))
    assert out_f32.shape == (B, S, D)
    err_f32 = float(jnp.max(jnp.abs(out_f32 - ref)))
    assert err_f32 < 5e-2, f"f32 kernel/reference mismatch: max abs err {err_f32}"

    # bf16 path (v6e/v7x recommendation): bf16 MXU operands, f32 accumulation.
    out_bf16 = jax.block_until_ready(
        encoder_forward(enc_input, layer_params, n_heads, compute_dtype=jnp.bfloat16))
    assert out_bf16.shape == (B, S, D)
    assert bool(jnp.all(jnp.isfinite(out_bf16)))
    err_bf16 = float(jnp.max(jnp.abs(out_bf16 - ref)))
    assert err_bf16 < 2e-1, f"bf16 kernel/reference mismatch: max abs err {err_bf16}"

    print("KERNEL_OK")
</pallas_src>

<mosaic_0001>
module attributes {stable_mosaic.version = 11 : i64} {
  func.func @encoder_layer_kernel(%arg0: i32, %arg1: i32, %arg2: memref<1x8x32xf32, #tpu.memory_space<vmem>>, %arg3: memref<1x8x32xf32, #tpu.memory_space<vmem>>, %arg4: memref<32x32xf32, #tpu.memory_space<vmem>>, %arg5: memref<1x32xf32, #tpu.memory_space<vmem>>, %arg6: memref<32x64xf32, #tpu.memory_space<vmem>>, %arg7: memref<1x64xf32, #tpu.memory_space<vmem>>, %arg8: memref<32x32xf32, #tpu.memory_space<vmem>>, %arg9: memref<1x32xf32, #tpu.memory_space<vmem>>, %arg10: memref<1x32xf32, #tpu.memory_space<vmem>>, %arg11: memref<1x32xf32, #tpu.memory_space<vmem>>, %arg12: memref<32x128xf32, #tpu.memory_space<vmem>>, %arg13: memref<1x128xf32, #tpu.memory_space<vmem>>, %arg14: memref<128x32xf32, #tpu.memory_space<vmem>>, %arg15: memref<1x32xf32, #tpu.memory_space<vmem>>, %arg16: memref<1x32xf32, #tpu.memory_space<vmem>>, %arg17: memref<1x32xf32, #tpu.memory_space<vmem>>, %arg18: memref<1x8x32xf32, #tpu.memory_space<vmem>>, %arg19: memref<4x8x8xf32, #tpu.memory_space<vmem>>, %arg20: memref<4x8x8xf32, #tpu.memory_space<vmem>>) attributes {dimension_semantics = [#tpu.dimension_semantics<parallel>, #tpu.dimension_semantics<arbitrary>], iteration_bounds = array<i64: 2, 1>, scalar_prefetch = 0 : i64, scratch_operands = 2 : i64, tpu.core_type = #tpu.core_type<tc>, window_params = [{transform_indices = @transform_0, window_bounds = array<i64: 1, 8, 32>}, {transform_indices = @transform_1, window_bounds = array<i64: 1, 8, 32>}, {pipeline_mode = #tpu.pipeline_mode<synchronous>, transform_indices = @transform_2, window_bounds = array<i64: 32, 32>}, {pipeline_mode = #tpu.pipeline_mode<synchronous>, transform_indices = @transform_3, window_bounds = array<i64: 1, 32>}, {pipeline_mode = #tpu.pipeline_mode<synchronous>, transform_indices = @transform_4, window_bounds = array<i64: 32, 64>}, {pipeline_mode = #tpu.pipeline_mode<synchronous>, transform_indices = @transform_5, window_bounds = array<i64: 1, 64>}, {pipeline_mode = #tpu.pipeline_mode<synchronous>, transform_indices = @transform_6, window_bounds = array<i64: 32, 32>}, {pipeline_mode = #tpu.pipeline_mode<synchronous>, transform_indices = @transform_7, window_bounds = array<i64: 1, 32>}, {pipeline_mode = #tpu.pipeline_mode<synchronous>, transform_indices = @transform_8, window_bounds = array<i64: 1, 32>}, {pipeline_mode = #tpu.pipeline_mode<synchronous>, transform_indices = @transform_9, window_bounds = array<i64: 1, 32>}, {pipeline_mode = #tpu.pipeline_mode<synchronous>, transform_indices = @transform_10, window_bounds = array<i64: 32, 128>}, {pipeline_mode = #tpu.pipeline_mode<synchronous>, transform_indices = @transform_11, window_bounds = array<i64: 1, 128>}, {pipeline_mode = #tpu.pipeline_mode<synchronous>, transform_indices = @transform_12, window_bounds = array<i64: 128, 32>}, {pipeline_mode = #tpu.pipeline_mode<synchronous>, transform_indices = @transform_13, window_bounds = array<i64: 1, 32>}, {pipeline_mode = #tpu.pipeline_mode<synchronous>, transform_indices = @transform_14, window_bounds = array<i64: 1, 32>}, {pipeline_mode = #tpu.pipeline_mode<synchronous>, transform_indices = @transform_15, window_bounds = array<i64: 1, 32>}, {transform_indices = @transform_16, window_bounds = array<i64: 1, 8, 32>}]} {
    %c0 = arith.constant 0 : index
    %c0_0 = arith.constant 0 : index
    %c0_1 = arith.constant 0 : index
    %0 = vector.load %arg2[%c0, %c0_0, %c0_1] : memref<1x8x32xf32, #tpu.memory_space<vmem>>, vector<1x8x32xf32>
    %1 = vector.shape_cast %0 : vector<1x8x32xf32> to vector<8x32xf32>
    %c0_i32 = arith.constant 0 : i32
    %2 = arith.cmpi eq, %arg1, %c0_i32 : i32
    %3 = arith.extui %2 : i1 to i32
    %c0_i32_2 = arith.constant 0 : i32
    %4 = arith.cmpi ne, %3, %c0_i32_2 : i32
    scf.if %4 {
      %c0_54 = arith.constant 0 : index
      %c0_55 = arith.constant 0 : index
      %c0_56 = arith.constant 0 : index
      %98 = vector.load %arg3[%c0_54, %c0_55, %c0_56] : memref<1x8x32xf32, #tpu.memory_space<vmem>>, vector<1x8x32xf32>
      %99 = vector.shape_cast %98 : vector<1x8x32xf32> to vector<8x32xf32>
      %c0_57 = arith.constant 0 : index
      %c0_58 = arith.constant 0 : index
      %100 = vector.load %arg6[%c0_57, %c0_58] : memref<32x64xf32, #tpu.memory_space<vmem>>, vector<32x64xf32>
      %cst_59 = arith.constant dense<0.000000e+00> : vector<8x64xf32>
      %101 = tpu.matmul %99, %100, %cst_59 {dimension_numbers = #tpu.dot_dimension_numbers<[1], [0], [0], [1], [0, 0, 1, 1], [], []>} : vector<8x32xf32>, vector<32x64xf32>, vector<8x64xf32> -> vector<8x64xf32>
      %c0_60 = arith.constant 0 : index
      %c0_61 = arith.constant 0 : index
      %102 = vector.load %arg7[%c0_60, %c0_61] : memref<1x64xf32, #tpu.memory_space<vmem>>, vector<1x64xf32>
      %103 = vector.broadcast %102 : vector<1x64xf32> to vector<8x64xf32>
      %104 = arith.addf %101, %103 : vector<8x64xf32>
      %105 = vector.extract_strided_slice %104 {offsets = [0, 0], sizes = [8, 32], strides = [1, 1]} : vector<8x64xf32> to vector<8x32xf32>
      %106 = vector.shape_cast %105 : vector<8x32xf32> to vector<8x4x8xf32>
      %107 = tpu.transpose %106, [1, 0, 2] : vector<8x4x8xf32> -> vector<4x8x8xf32>
      %108 = vector.extract_strided_slice %104 {offsets = [0, 32], sizes = [8, 32], strides = [1, 1]} : vector<8x64xf32> to vector<8x32xf32>
      %109 = vector.shape_cast %108 : vector<8x32xf32> to vector<8x4x8xf32>
      %110 = tpu.transpose %109, [1, 0, 2] : vector<8x4x8xf32> -> vector<4x8x8xf32>
      %c0_62 = arith.constant 0 : index
      %c0_63 = arith.constant 0 : index
      %c0_64 = arith.constant 0 : index
      %111 = vector.load %arg19[%c0_62, %c0_63, %c0_64] : memref<4x8x8xf32, #tpu.memory_space<vmem>>, vector<4x8x8xf32>
      tpu.vector_store %arg19[%c0_62, %c0_63, %c0_64], %107 {strides = array<i32>} : memref<4x8x8xf32, #tpu.memory_space<vmem>>, vector<4x8x8xf32>,
      %c0_65 = arith.constant 0 : index
      %c0_66 = arith.constant 0 : index
      %c0_67 = arith.constant 0 : index
      %112 = vector.load %arg20[%c0_65, %c0_66, %c0_67] : memref<4x8x8xf32, #tpu.memory_space<vmem>>, vector<4x8x8xf32>
      tpu.vector_store %arg20[%c0_65, %c0_66, %c0_67], %110 {strides = array<i32>} : memref<4x8x8xf32, #tpu.memory_space<vmem>>, vector<4x8x8xf32>,
    } else {
    }
    %c0_3 = arith.constant 0 : index
    %c0_4 = arith.constant 0 : index
    %5 = vector.load %arg4[%c0_3, %c0_4] : memref<32x32xf32, #tpu.memory_space<vmem>>, vector<32x32xf32>
    %cst = arith.constant dense<0.000000e+00> : vector<8x32xf32>
    %6 = tpu.matmul %1, %5, %cst {dimension_numbers = #tpu.dot_dimension_numbers<[1], [0], [0], [1], [0, 0, 1, 1], [], []>} : vector<8x32xf32>, vector<32x32xf32>, vector<8x32xf32> -> vector<8x32xf32>
    %c0_5 = arith.constant 0 : index
    %c0_6 = arith.constant 0 : index
    %7 = vector.load %arg5[%c0_5, %c0_6] : memref<1x32xf32, #tpu.memory_space<vmem>>, vector<1x32xf32>
    %8 = vector.broadcast %7 : vector<1x32xf32> to vector<8x32xf32>
    %9 = arith.addf %6, %8 : vector<8x32xf32>
    %10 = vector.shape_cast %9 : vector<8x32xf32> to vector<8x4x8xf32>
    %11 = tpu.transpose %10, [1, 0, 2] : vector<8x4x8xf32> -> vector<4x8x8xf32>
    %c0_7 = arith.constant 0 : index
    %c0_8 = arith.constant 0 : index
    %c0_9 = arith.constant 0 : index
    %12 = vector.load %arg19[%c0_7, %c0_8, %c0_9] : memref<4x8x8xf32, #tpu.memory_space<vmem>>, vector<4x8x8xf32>
    "tpu.trace_start"() <{level = 10 : i32, message = "hqd,hkd->hqk"}> : () -> ()
    %cst_10 = arith.constant dense<0.000000e+00> : vector<4x8x8xf32>
    %13 = tpu.matmul %11, %12, %cst_10 {dimension_numbers = #tpu.dot_dimension_numbers<[2], [2], [1], [1], [0, 0, 0, 1, 1, 1], [0], [0]>} : vector<4x8x8xf32>, vector<4x8x8xf32>, vector<4x8x8xf32> -> vector<4x8x8xf32>
    "tpu.trace_stop"() : () -> ()
    %cst_11 = arith.constant dense<0xFF800000> : vector<4x8xf32>
    %14 = vector.multi_reduction <maximumf>, %13, %cst_11 [2] : vector<4x8x8xf32> to vector<4x8xf32>
    %15 = vector.shape_cast %14 : vector<4x8xf32> to vector<4x8x1xf32>
    %16 = vector.broadcast %15 : vector<4x8x1xf32> to vector<4x8x8xf32>
    %17 = arith.subf %13, %16 : vector<4x8x8xf32>
    %18 = math.exp %17 : vector<4x8x8xf32>
    %cst_12 = arith.constant dense<0.000000e+00> : vector<4x8xf32>
    %19 = vector.multi_reduction <add>, %18, %cst_12 [2] : vector<4x8x8xf32> to vector<4x8xf32>
    %20 = vector.shape_cast %19 : vector<4x8xf32> to vector<4x8x1xf32>
    %21 = tpu.reciprocal %20 {approx = true} : vector<4x8x1xf32> -> vector<4x8x1xf32>
    %22 = vector.broadcast %21 : vector<4x8x1xf32> to vector<4x8x8xf32>
    %23 = arith.mulf %18, %22 : vector<4x8x8xf32>
    %c0_13 = arith.constant 0 : index
    %c0_14 = arith.constant 0 : index
    %c0_15 = arith.constant 0 : index
    %24 = vector.load %arg20[%c0_13, %c0_14, %c0_15] : memref<4x8x8xf32, #tpu.memory_space<vmem>>, vector<4x8x8xf32>
    "tpu.trace_start"() <{level = 10 : i32, message = "hqk,hkd->hqd"}> : () -> ()
    %cst_16 = arith.constant dense<0.000000e+00> : vector<4x8x8xf32>
    %25 = tpu.matmul %23, %24, %cst_16 {dimension_numbers = #tpu.dot_dimension_numbers<[2], [1], [1], [2], [0, 0, 0, 1, 1, 2], [0], [0]>} : vector<4x8x8xf32>, vector<4x8x8xf32>, vector<4x8x8xf32> -> vector<4x8x8xf32>
    "tpu.trace_stop"() : () -> ()
    %26 = tpu.transpose %25, [1, 0, 2] : vector<4x8x8xf32> -> vector<8x4x8xf32>
    %27 = vector.shape_cast %26 : vector<8x4x8xf32> to vector<8x32xf32>
    %c0_17 = arith.constant 0 : index
    %c0_18 = arith.constant 0 : index
    %28 = vector.load %arg8[%c0_17, %c0_18] : memref<32x32xf32, #tpu.memory_space<vmem>>, vector<32x32xf32>
    %cst_19 = arith.constant dense<0.000000e+00> : vector<8x32xf32>
    %29 = tpu.matmul %27, %28, %cst_19 {dimension_numbers = #tpu.dot_dimension_numbers<[1], [0], [0], [1], [0, 0, 1, 1], [], []>} : vector<8x32xf32>, vector<32x32xf32>, vector<8x32xf32> -> vector<8x32xf32>
    %c0_20 = arith.constant 0 : index
    %c0_21 = arith.constant 0 : index
    %30 = vector.load %arg9[%c0_20, %c0_21] : memref<1x32xf32, #tpu.memory_space<vmem>>, vector<1x32xf32>
    %31 = vector.broadcast %30 : vector<1x32xf32> to vector<8x32xf32>
    %32 = arith.addf %29, %31 : vector<8x32xf32>
    %33 = arith.addf %32, %1 : vector<8x32xf32>
    %c0_22 = arith.constant 0 : index
    %c0_23 = arith.constant 0 : index
    %34 = vector.load %arg10[%c0_22, %c0_23] : memref<1x32xf32, #tpu.memory_space<vmem>>, vector<1x32xf32>
    %c0_24 = arith.constant 0 : index
    %c0_25 = arith.constant 0 : index
    %35 = vector.load %arg11[%c0_24, %c0_25] : memref<1x32xf32, #tpu.memory_space<vmem>>, vector<1x32xf32>
    %cst_26 = arith.constant dense<0.000000e+00> : vector<8xf32>
    %36 = vector.multi_reduction <add>, %33, %cst_26 [1] : vector<8x32xf32> to vector<8xf32>
    %37 = vector.shape_cast %36 : vector<8xf32> to vector<8x1xf32>
    %cst_27 = arith.constant 3.200000e+01 : f32
    %38 = vector.broadcast %cst_27 : f32 to vector<8x1xf32>
    %39 = arith.divf %37, %38 : vector<8x1xf32>
    %40 = vector.broadcast %39 : vector<8x1xf32> to vector<8x32xf32>
    %41 = arith.subf %33, %40 : vector<8x32xf32>
    %42 = arith.mulf %41, %41 : vector<8x32xf32>
    %cst_28 = arith.constant dense<0.000000e+00> : vector<8xf32>
    %43 = vector.multi_reduction <add>, %42, %cst_28 [1] : vector<8x32xf32> to vector<8xf32>
    %44 = vector.shape_cast %43 : vector<8xf32> to vector<8x1xf32>
    %cst_29 = arith.constant 3.200000e+01 : f32
    %45 = vector.broadcast %cst_29 : f32 to vector<8x1xf32>
    %46 = arith.divf %44, %45 : vector<8x1xf32>
    %47 = vector.broadcast %39 : vector<8x1xf32> to vector<8x32xf32>
    %48 = arith.subf %33, %47 : vector<8x32xf32>
    %cst_30 = arith.constant 9.99999974E-6 : f32
    %49 = vector.broadcast %cst_30 : f32 to vector<8x1xf32>
    %50 = arith.addf %46, %49 : vector<8x1xf32>
    %51 = math.rsqrt %50 : vector<8x1xf32>
    %52 = vector.broadcast %51 : vector<8x1xf32> to vector<8x32xf32>
    %53 = arith.mulf %48, %52 : vector<8x32xf32>
    %54 = vector.broadcast %34 : vector<1x32xf32> to vector<8x32xf32>
    %55 = arith.mulf %53, %54 : vector<8x32xf32>
    %56 = vector.broadcast %35 : vector<1x32xf32> to vector<8x32xf32>
    %57 = arith.addf %55, %56 : vector<8x32xf32>
    %c0_31 = arith.constant 0 : index
    %c0_32 = arith.constant 0 : index
    %58 = vector.load %arg12[%c0_31, %c0_32] : memref<32x128xf32, #tpu.memory_space<vmem>>, vector<32x128xf32>
    %cst_33 = arith.constant dense<0.000000e+00> : vector<8x128xf32>
    %59 = tpu.matmul %57, %58, %cst_33 {dimension_numbers = #tpu.dot_dimension_numbers<[1], [0], [0], [1], [0, 0, 1, 1], [], []>} : vector<8x32xf32>, vector<32x128xf32>, vector<8x128xf32> -> vector<8x128xf32>
    %c0_34 = arith.constant 0 : index
    %c0_35 = arith.constant 0 : index
    %60 = vector.load %arg13[%c0_34, %c0_35] : memref<1x128xf32, #tpu.memory_space<vmem>>, vector<1x128xf32>
    %61 = vector.broadcast %60 : vector<1x128xf32> to vector<8x128xf32>
    %62 = arith.addf %59, %61 : vector<8x128xf32>
    %cst_36 = arith.constant 0.000000e+00 : f32
    %63 = vector.broadcast %cst_36 : f32 to vector<8x128xf32>
    %64 = arith.maximumf %62, %63 : vector<8x128xf32>
    %c0_37 = arith.constant 0 : index
    %c0_38 = arith.constant 0 : index
    %65 = vector.load %arg14[%c0_37, %c0_38] : memref<128x32xf32, #tpu.memory_space<vmem>>, vector<128x32xf32>
    %cst_39 = arith.constant dense<0.000000e+00> : vector<8x32xf32>
    %66 = tpu.matmul %64, %65, %cst_39 {dimension_numbers = #tpu.dot_dimension_numbers<[1], [0], [0], [1], [0, 0, 1, 1], [], []>} : vector<8x128xf32>, vector<128x32xf32>, vector<8x32xf32> -> vector<8x32xf32>
    %c0_40 = arith.constant 0 : index
    %c0_41 = arith.constant 0 : index
    %67 = vector.load %arg15[%c0_40, %c0_41] : memref<1x32xf32, #tpu.memory_space<vmem>>, vector<1x32xf32>
    %68 = vector.broadcast %67 : vector<1x32xf32> to vector<8x32xf32>
    %69 = arith.addf %66, %68 : vector<8x32xf32>
    %70 = arith.addf %69, %57 : vector<8x32xf32>
    %c0_42 = arith.constant 0 : index
    %c0_43 = arith.constant 0 : index
    %71 = vector.load %arg16[%c0_42, %c0_43] : memref<1x32xf32, #tpu.memory_space<vmem>>, vector<1x32xf32>
    %c0_44 = arith.constant 0 : index
    %c0_45 = arith.constant 0 : index
    %72 = vector.load %arg17[%c0_44, %c0_45] : memref<1x32xf32, #tpu.memory_space<vmem>>, vector<1x32xf32>
    %cst_46 = arith.constant dense<0.000000e+00> : vector<8xf32>
    %73 = vector.multi_reduction <add>, %70, %cst_46 [1] : vector<8x32xf32> to vector<8xf32>
    %74 = vector.shape_cast %73 : vector<8xf32> to vector<8x1xf32>
    %cst_47 = arith.constant 3.200000e+01 : f32
    %75 = vector.broadcast %cst_47 : f32 to vector<8x1xf32>
    %76 = arith.divf %74, %75 : vector<8x1xf32>
    %77 = vector.broadcast %76 : vector<8x1xf32> to vector<8x32xf32>
    %78 = arith.subf %70, %77 : vector<8x32xf32>
    %79 = arith.mulf %78, %78 : vector<8x32xf32>
    %cst_48 = arith.constant dense<0.000000e+00> : vector<8xf32>
    %80 = vector.multi_reduction <add>, %79, %cst_48 [1] : vector<8x32xf32> to vector<8xf32>
    %81 = vector.shape_cast %80 : vector<8xf32> to vector<8x1xf32>
    %cst_49 = arith.constant 3.200000e+01 : f32
    %82 = vector.broadcast %cst_49 : f32 to vector<8x1xf32>
    %83 = arith.divf %81, %82 : vector<8x1xf32>
    %84 = vector.broadcast %76 : vector<8x1xf32> to vector<8x32xf32>
    %85 = arith.subf %70, %84 : vector<8x32xf32>
    %cst_50 = arith.constant 9.99999974E-6 : f32
    %86 = vector.broadcast %cst_50 : f32 to vector<8x1xf32>
    %87 = arith.addf %83, %86 : vector<8x1xf32>
    %88 = math.rsqrt %87 : vector<8x1xf32>
    %89 = vector.broadcast %88 : vector<8x1xf32> to vector<8x32xf32>
    %90 = arith.mulf %85, %89 : vector<8x32xf32>
    %91 = vector.broadcast %71 : vector<1x32xf32> to vector<8x32xf32>
    %92 = arith.mulf %90, %91 : vector<8x32xf32>
    %93 = vector.broadcast %72 : vector<1x32xf32> to vector<8x32xf32>
    %94 = arith.addf %92, %93 : vector<8x32xf32>
    %c0_51 = arith.constant 0 : index
    %c0_52 = arith.constant 0 : index
    %c0_53 = arith.constant 0 : index
    %95 = vector.load %arg18[%c0_51, %c0_52, %c0_53] : memref<1x8x32xf32, #tpu.memory_space<vmem>>, vector<1x8x32xf32>
    %96 = vector.shape_cast %95 : vector<1x8x32xf32> to vector<8x32xf32>
    %97 = vector.shape_cast %94 : vector<8x32xf32> to vector<1x8x32xf32>
    tpu.vector_store %arg18[%c0_51, %c0_52, %c0_53], %97 {strides = array<i32>} : memref<1x8x32xf32, #tpu.memory_space<vmem>>, vector<1x8x32xf32>,
    return
  }
  func.func @transform_0(%arg0: i32, %arg1: i32) -> (i32, i32, i32) {
    %c0_i32 = arith.constant 0 : i32
    %c0_i32_0 = arith.constant 0 : i32
    return %arg0, %arg1, %c0_i32 : i32, i32, i32
  }
  func.func @transform_1(%arg0: i32, %arg1: i32) -> (i32, i32, i32) {
    %c0_i32 = arith.constant 0 : i32
    %c0_i32_0 = arith.constant 0 : i32
    %c0_i32_1 = arith.constant 0 : i32
    return %arg0, %c0_i32, %c0_i32_0 : i32, i32, i32
  }
  func.func @transform_2(%arg0: i32, %arg1: i32) -> (i32, i32) {
    %c0_i32 = arith.constant 0 : i32
    %c0_i32_0 = arith.constant 0 : i32
    %c0_i32_1 = arith.constant 0 : i32
    return %c0_i32, %c0_i32_0 : i32, i32
  }
  func.func @transform_3(%arg0: i32, %arg1: i32) -> (i32, i32) {
    %c0_i32 = arith.constant 0 : i32
    %c0_i32_0 = arith.constant 0 : i32
    %c0_i32_1 = arith.constant 0 : i32
    return %c0_i32, %c0_i32_0 : i32, i32
  }
  func.func @transform_4(%arg0: i32, %arg1: i32) -> (i32, i32) {
    %c0_i32 = arith.constant 0 : i32
    %c0_i32_0 = arith.constant 0 : i32
    %c0_i32_1 = arith.constant 0 : i32
    return %c0_i32, %c0_i32_0 : i32, i32
  }
  func.func @transform_5(%arg0: i32, %arg1: i32) -> (i32, i32) {
    %c0_i32 = arith.constant 0 : i32
    %c0_i32_0 = arith.constant 0 : i32
    %c0_i32_1 = arith.constant 0 : i32
    return %c0_i32, %c0_i32_0 : i32, i32
  }
  func.func @transform_6(%arg0: i32, %arg1: i32) -> (i32, i32) {
    %c0_i32 = arith.constant 0 : i32
    %c0_i32_0 = arith.constant 0 : i32
    %c0_i32_1 = arith.constant 0 : i32
    return %c0_i32, %c0_i32_0 : i32, i32
  }
  func.func @transform_7(%arg0: i32, %arg1: i32) -> (i32, i32) {
    %c0_i32 = arith.constant 0 : i32
    %c0_i32_0 = arith.constant 0 : i32
    %c0_i32_1 = arith.constant 0 : i32
    return %c0_i32, %c0_i32_0 : i32, i32
  }
  func.func @transform_8(%arg0: i32, %arg1: i32) -> (i32, i32) {
    %c0_i32 = arith.constant 0 : i32
    %c0_i32_0 = arith.constant 0 : i32
    %c0_i32_1 = arith.constant 0 : i32
    return %c0_i32, %c0_i32_0 : i32, i32
  }
  func.func @transform_9(%arg0: i32, %arg1: i32) -> (i32, i32) {
    %c0_i32 = arith.constant 0 : i32
    %c0_i32_0 = arith.constant 0 : i32
    %c0_i32_1 = arith.constant 0 : i32
    return %c0_i32, %c0_i32_0 : i32, i32
  }
  func.func @transform_10(%arg0: i32, %arg1: i32) -> (i32, i32) {
    %c0_i32 = arith.constant 0 : i32
    %c0_i32_0 = arith.constant 0 : i32
    %c0_i32_1 = arith.constant 0 : i32
    return %c0_i32, %c0_i32_0 : i32, i32
  }
  func.func @transform_11(%arg0: i32, %arg1: i32) -> (i32, i32) {
    %c0_i32 = arith.constant 0 : i32
    %c0_i32_0 = arith.constant 0 : i32
    %c0_i32_1 = arith.constant 0 : i32
    return %c0_i32, %c0_i32_0 : i32, i32
  }
  func.func @transform_12(%arg0: i32, %arg1: i32) -> (i32, i32) {
    %c0_i32 = arith.constant 0 : i32
    %c0_i32_0 = arith.constant 0 : i32
    %c0_i32_1 = arith.constant 0 : i32
    return %c0_i32, %c0_i32_0 : i32, i32
  }
  func.func @transform_13(%arg0: i32, %arg1: i32) -> (i32, i32) {
    %c0_i32 = arith.constant 0 : i32
    %c0_i32_0 = arith.constant 0 : i32
    %c0_i32_1 = arith.constant 0 : i32
    return %c0_i32, %c0_i32_0 : i32, i32
  }
  func.func @transform_14(%arg0: i32, %arg1: i32) -> (i32, i32) {
    %c0_i32 = arith.constant 0 : i32
    %c0_i32_0 = arith.constant 0 : i32
    %c0_i32_1 = arith.constant 0 : i32
    return %c0_i32, %c0_i32_0 : i32, i32
  }
  func.func @transform_15(%arg0: i32, %arg1: i32) -> (i32, i32) {
    %c0_i32 = arith.constant 0 : i32
    %c0_i32_0 = arith.constant 0 : i32
    %c0_i32_1 = arith.constant 0 : i32
    return %c0_i32, %c0_i32_0 : i32, i32
  }
  func.func @transform_16(%arg0: i32, %arg1: i32) -> (i32, i32, i32) {
    %c0_i32 = arith.constant 0 : i32
    %c0_i32_0 = arith.constant 0 : i32
    return %arg0, %arg1, %c0_i32 : i32, i32, i32
  }
}

module attributes {stable_mosaic.version = 11 : i64} {
  func.func @encoder_layer_kernel(%arg0: i32, %arg1: i32, %arg2: memref<1x8x32xf32, #tpu.memory_space<vmem>>, %arg3: memref<1x8x32xf32, #tpu.memory_space<vmem>>, %arg4: memref<32x32xf32, #tpu.memory_space<vmem>>, %arg5: memref<1x32xf32, #tpu.memory_space<vmem>>, %arg6: memref<32x64xf32, #tpu.memory_space<vmem>>, %arg7: memref<1x64xf32, #tpu.memory_space<vmem>>, %arg8: memref<32x32xf32, #tpu.memory_space<vmem>>, %arg9: memref<1x32xf32, #tpu.memory_space<vmem>>, %arg10: memref<1x32xf32, #tpu.memory_space<vmem>>, %arg11: memref<1x32xf32, #tpu.memory_space<vmem>>, %arg12: memref<32x128xf32, #tpu.memory_space<vmem>>, %arg13: memref<1x128xf32, #tpu.memory_space<vmem>>, %arg14: memref<128x32xf32, #tpu.memory_space<vmem>>, %arg15: memref<1x32xf32, #tpu.memory_space<vmem>>, %arg16: memref<1x32xf32, #tpu.memory_space<vmem>>, %arg17: memref<1x32xf32, #tpu.memory_space<vmem>>, %arg18: memref<1x8x32xf32, #tpu.memory_space<vmem>>, %arg19: memref<4x8x8xf32, #tpu.memory_space<vmem>>, %arg20: memref<4x8x8xf32, #tpu.memory_space<vmem>>) attributes {dimension_semantics = [#tpu.dimension_semantics<parallel>, #tpu.dimension_semantics<arbitrary>], iteration_bounds = array<i64: 2, 1>, scalar_prefetch = 0 : i64, scratch_operands = 2 : i64, tpu.core_type = #tpu.core_type<tc>, window_params = [{transform_indices = @transform_0, window_bounds = array<i64: 1, 8, 32>}, {transform_indices = @transform_1, window_bounds = array<i64: 1, 8, 32>}, {pipeline_mode = #tpu.pipeline_mode<synchronous>, transform_indices = @transform_2, window_bounds = array<i64: 32, 32>}, {pipeline_mode = #tpu.pipeline_mode<synchronous>, transform_indices = @transform_3, window_bounds = array<i64: 1, 32>}, {pipeline_mode = #tpu.pipeline_mode<synchronous>, transform_indices = @transform_4, window_bounds = array<i64: 32, 64>}, {pipeline_mode = #tpu.pipeline_mode<synchronous>, transform_indices = @transform_5, window_bounds = array<i64: 1, 64>}, {pipeline_mode = #tpu.pipeline_mode<synchronous>, transform_indices = @transform_6, window_bounds = array<i64: 32, 32>}, {pipeline_mode = #tpu.pipeline_mode<synchronous>, transform_indices = @transform_7, window_bounds = array<i64: 1, 32>}, {pipeline_mode = #tpu.pipeline_mode<synchronous>, transform_indices = @transform_8, window_bounds = array<i64: 1, 32>}, {pipeline_mode = #tpu.pipeline_mode<synchronous>, transform_indices = @transform_9, window_bounds = array<i64: 1, 32>}, {pipeline_mode = #tpu.pipeline_mode<synchronous>, transform_indices = @transform_10, window_bounds = array<i64: 32, 128>}, {pipeline_mode = #tpu.pipeline_mode<synchronous>, transform_indices = @transform_11, window_bounds = array<i64: 1, 128>}, {pipeline_mode = #tpu.pipeline_mode<synchronous>, transform_indices = @transform_12, window_bounds = array<i64: 128, 32>}, {pipeline_mode = #tpu.pipeline_mode<synchronous>, transform_indices = @transform_13, window_bounds = array<i64: 1, 32>}, {pipeline_mode = #tpu.pipeline_mode<synchronous>, transform_indices = @transform_14, window_bounds = array<i64: 1, 32>}, {pipeline_mode = #tpu.pipeline_mode<synchronous>, transform_indices = @transform_15, window_bounds = array<i64: 1, 32>}, {transform_indices = @transform_16, window_bounds = array<i64: 1, 8, 32>}]} {
    %c0 = arith.constant 0 : index
    %c0_0 = arith.constant 0 : index
    %c0_1 = arith.constant 0 : index
    %0 = vector.load %arg2[%c0, %c0_0, %c0_1] : memref<1x8x32xf32, #tpu.memory_space<vmem>>, vector<1x8x32xf32>
    %1 = vector.shape_cast %0 : vector<1x8x32xf32> to vector<8x32xf32>
    %c0_i32 = arith.constant 0 : i32
    %2 = arith.cmpi eq, %arg1, %c0_i32 : i32
    %3 = arith.extui %2 : i1 to i32
    %c0_i32_2 = arith.constant 0 : i32
    %4 = arith.cmpi ne, %3, %c0_i32_2 : i32
    scf.if %4 {
      %c0_54 = arith.constant 0 : index
      %c0_55 = arith.constant 0 : index
      %c0_56 = arith.constant 0 : index
      %98 = vector.load %arg3[%c0_54, %c0_55, %c0_56] : memref<1x8x32xf32, #tpu.memory_space<vmem>>, vector<1x8x32xf32>
      %99 = vector.shape_cast %98 : vector<1x8x32xf32> to vector<8x32xf32>
      %c0_57 = arith.constant 0 : index
      %c0_58 = arith.constant 0 : index
      %100 = vector.load %arg6[%c0_57, %c0_58] : memref<32x64xf32, #tpu.memory_space<vmem>>, vector<32x64xf32>
      %cst_59 = arith.constant dense<0.000000e+00> : vector<8x64xf32>
      %101 = tpu.matmul %99, %100, %cst_59 {dimension_numbers = #tpu.dot_dimension_numbers<[1], [0], [0], [1], [0, 0, 1, 1], [], []>} : vector<8x32xf32>, vector<32x64xf32>, vector<8x64xf32> -> vector<8x64xf32>
      %c0_60 = arith.constant 0 : index
      %c0_61 = arith.constant 0 : index
      %102 = vector.load %arg7[%c0_60, %c0_61] : memref<1x64xf32, #tpu.memory_space<vmem>>, vector<1x64xf32>
      %103 = vector.broadcast %102 : vector<1x64xf32> to vector<8x64xf32>
      %104 = arith.addf %101, %103 : vector<8x64xf32>
      %105 = vector.extract_strided_slice %104 {offsets = [0, 0], sizes = [8, 32], strides = [1, 1]} : vector<8x64xf32> to vector<8x32xf32>
      %106 = vector.shape_cast %105 : vector<8x32xf32> to vector<8x4x8xf32>
      %107 = tpu.transpose %106, [1, 0, 2] : vector<8x4x8xf32> -> vector<4x8x8xf32>
      %108 = vector.extract_strided_slice %104 {offsets = [0, 32], sizes = [8, 32], strides = [1, 1]} : vector<8x64xf32> to vector<8x32xf32>
      %109 = vector.shape_cast %108 : vector<8x32xf32> to vector<8x4x8xf32>
      %110 = tpu.transpose %109, [1, 0, 2] : vector<8x4x8xf32> -> vector<4x8x8xf32>
      %c0_62 = arith.constant 0 : index
      %c0_63 = arith.constant 0 : index
      %c0_64 = arith.constant 0 : index
      %111 = vector.load %arg19[%c0_62, %c0_63, %c0_64] : memref<4x8x8xf32, #tpu.memory_space<vmem>>, vector<4x8x8xf32>
      tpu.vector_store %arg19[%c0_62, %c0_63, %c0_64], %107 {strides = array<i32>} : memref<4x8x8xf32, #tpu.memory_space<vmem>>, vector<4x8x8xf32>,
      %c0_65 = arith.constant 0 : index
      %c0_66 = arith.constant 0 : index
      %c0_67 = arith.constant 0 : index
      %112 = vector.load %arg20[%c0_65, %c0_66, %c0_67] : memref<4x8x8xf32, #tpu.memory_space<vmem>>, vector<4x8x8xf32>
      tpu.vector_store %arg20[%c0_65, %c0_66, %c0_67], %110 {strides = array<i32>} : memref<4x8x8xf32, #tpu.memory_space<vmem>>, vector<4x8x8xf32>,
    } else {
    }
    %c0_3 = arith.constant 0 : index
    %c0_4 = arith.constant 0 : index
    %5 = vector.load %arg4[%c0_3, %c0_4] : memref<32x32xf32, #tpu.memory_space<vmem>>, vector<32x32xf32>
    %cst = arith.constant dense<0.000000e+00> : vector<8x32xf32>
    %6 = tpu.matmul %1, %5, %cst {dimension_numbers = #tpu.dot_dimension_numbers<[1], [0], [0], [1], [0, 0, 1, 1], [], []>} : vector<8x32xf32>, vector<32x32xf32>, vector<8x32xf32> -> vector<8x32xf32>
    %c0_5 = arith.constant 0 : index
    %c0_6 = arith.constant 0 : index
    %7 = vector.load %arg5[%c0_5, %c0_6] : memref<1x32xf32, #tpu.memory_space<vmem>>, vector<1x32xf32>
    %8 = vector.broadcast %7 : vector<1x32xf32> to vector<8x32xf32>
    %9 = arith.addf %6, %8 : vector<8x32xf32>
    %10 = vector.shape_cast %9 : vector<8x32xf32> to vector<8x4x8xf32>
    %11 = tpu.transpose %10, [1, 0, 2] : vector<8x4x8xf32> -> vector<4x8x8xf32>
    %c0_7 = arith.constant 0 : index
    %c0_8 = arith.constant 0 : index
    %c0_9 = arith.constant 0 : index
    %12 = vector.load %arg19[%c0_7, %c0_8, %c0_9] : memref<4x8x8xf32, #tpu.memory_space<vmem>>, vector<4x8x8xf32>
    "tpu.trace_start"() <{level = 10 : i32, message = "hqd,hkd->hqk"}> : () -> ()
    %cst_10 = arith.constant dense<0.000000e+00> : vector<4x8x8xf32>
    %13 = tpu.matmul %11, %12, %cst_10 {dimension_numbers = #tpu.dot_dimension_numbers<[2], [2], [1], [1], [0, 0, 0, 1, 1, 1], [0], [0]>} : vector<4x8x8xf32>, vector<4x8x8xf32>, vector<4x8x8xf32> -> vector<4x8x8xf32>
    "tpu.trace_stop"() : () -> ()
    %cst_11 = arith.constant dense<0xFF800000> : vector<4x8xf32>
    %14 = vector.multi_reduction <maximumf>, %13, %cst_11 [2] : vector<4x8x8xf32> to vector<4x8xf32>
    %15 = vector.shape_cast %14 : vector<4x8xf32> to vector<4x8x1xf32>
    %16 = vector.broadcast %15 : vector<4x8x1xf32> to vector<4x8x8xf32>
    %17 = arith.subf %13, %16 : vector<4x8x8xf32>
    %18 = math.exp %17 : vector<4x8x8xf32>
    %cst_12 = arith.constant dense<0.000000e+00> : vector<4x8xf32>
    %19 = vector.multi_reduction <add>, %18, %cst_12 [2] : vector<4x8x8xf32> to vector<4x8xf32>
    %20 = vector.shape_cast %19 : vector<4x8xf32> to vector<4x8x1xf32>
    %21 = tpu.reciprocal %20 {approx = true} : vector<4x8x1xf32> -> vector<4x8x1xf32>
    %22 = vector.broadcast %21 : vector<4x8x1xf32> to vector<4x8x8xf32>
    %23 = arith.mulf %18, %22 : vector<4x8x8xf32>
    %c0_13 = arith.constant 0 : index
    %c0_14 = arith.constant 0 : index
    %c0_15 = arith.constant 0 : index
    %24 = vector.load %arg20[%c0_13, %c0_14, %c0_15] : memref<4x8x8xf32, #tpu.memory_space<vmem>>, vector<4x8x8xf32>
    "tpu.trace_start"() <{level = 10 : i32, message = "hqk,hkd->hqd"}> : () -> ()
    %cst_16 = arith.constant dense<0.000000e+00> : vector<4x8x8xf32>
    %25 = tpu.matmul %23, %24, %cst_16 {dimension_numbers = #tpu.dot_dimension_numbers<[2], [1], [1], [2], [0, 0, 0, 1, 1, 2], [0], [0]>} : vector<4x8x8xf32>, vector<4x8x8xf32>, vector<4x8x8xf32> -> vector<4x8x8xf32>
    "tpu.trace_stop"() : () -> ()
    %26 = tpu.transpose %25, [1, 0, 2] : vector<4x8x8xf32> -> vector<8x4x8xf32>
    %27 = vector.shape_cast %26 : vector<8x4x8xf32> to vector<8x32xf32>
    %c0_17 = arith.constant 0 : index
    %c0_18 = arith.constant 0 : index
    %28 = vector.load %arg8[%c0_17, %c0_18] : memref<32x32xf32, #tpu.memory_space<vmem>>, vector<32x32xf32>
    %cst_19 = arith.constant dense<0.000000e+00> : vector<8x32xf32>
    %29 = tpu.matmul %27, %28, %cst_19 {dimension_numbers = #tpu.dot_dimension_numbers<[1], [0], [0], [1], [0, 0, 1, 1], [], []>} : vector<8x32xf32>, vector<32x32xf32>, vector<8x32xf32> -> vector<8x32xf32>
    %c0_20 = arith.constant 0 : index
    %c0_21 = arith.constant 0 : index
    %30 = vector.load %arg9[%c0_20, %c0_21] : memref<1x32xf32, #tpu.memory_space<vmem>>, vector<1x32xf32>
    %31 = vector.broadcast %30 : vector<1x32xf32> to vector<8x32xf32>
    %32 = arith.addf %29, %31 : vector<8x32xf32>
    %33 = arith.addf %32, %1 : vector<8x32xf32>
    %c0_22 = arith.constant 0 : index
    %c0_23 = arith.constant 0 : index
    %34 = vector.load %arg10[%c0_22, %c0_23] : memref<1x32xf32, #tpu.memory_space<vmem>>, vector<1x32xf32>
    %c0_24 = arith.constant 0 : index
    %c0_25 = arith.constant 0 : index
    %35 = vector.load %arg11[%c0_24, %c0_25] : memref<1x32xf32, #tpu.memory_space<vmem>>, vector<1x32xf32>
    %cst_26 = arith.constant dense<0.000000e+00> : vector<8xf32>
    %36 = vector.multi_reduction <add>, %33, %cst_26 [1] : vector<8x32xf32> to vector<8xf32>
    %37 = vector.shape_cast %36 : vector<8xf32> to vector<8x1xf32>
    %cst_27 = arith.constant 3.200000e+01 : f32
    %38 = vector.broadcast %cst_27 : f32 to vector<8x1xf32>
    %39 = arith.divf %37, %38 : vector<8x1xf32>
    %40 = vector.broadcast %39 : vector<8x1xf32> to vector<8x32xf32>
    %41 = arith.subf %33, %40 : vector<8x32xf32>
    %42 = arith.mulf %41, %41 : vector<8x32xf32>
    %cst_28 = arith.constant dense<0.000000e+00> : vector<8xf32>
    %43 = vector.multi_reduction <add>, %42, %cst_28 [1] : vector<8x32xf32> to vector<8xf32>
    %44 = vector.shape_cast %43 : vector<8xf32> to vector<8x1xf32>
    %cst_29 = arith.constant 3.200000e+01 : f32
    %45 = vector.broadcast %cst_29 : f32 to vector<8x1xf32>
    %46 = arith.divf %44, %45 : vector<8x1xf32>
    %47 = vector.broadcast %39 : vector<8x1xf32> to vector<8x32xf32>
    %48 = arith.subf %33, %47 : vector<8x32xf32>
    %cst_30 = arith.constant 9.99999974E-6 : f32
    %49 = vector.broadcast %cst_30 : f32 to vector<8x1xf32>
    %50 = arith.addf %46, %49 : vector<8x1xf32>
    %51 = math.rsqrt %50 : vector<8x1xf32>
    %52 = vector.broadcast %51 : vector<8x1xf32> to vector<8x32xf32>
    %53 = arith.mulf %48, %52 : vector<8x32xf32>
    %54 = vector.broadcast %34 : vector<1x32xf32> to vector<8x32xf32>
    %55 = arith.mulf %53, %54 : vector<8x32xf32>
    %56 = vector.broadcast %35 : vector<1x32xf32> to vector<8x32xf32>
    %57 = arith.addf %55, %56 : vector<8x32xf32>
    %c0_31 = arith.constant 0 : index
    %c0_32 = arith.constant 0 : index
    %58 = vector.load %arg12[%c0_31, %c0_32] : memref<32x128xf32, #tpu.memory_space<vmem>>, vector<32x128xf32>
    %cst_33 = arith.constant dense<0.000000e+00> : vector<8x128xf32>
    %59 = tpu.matmul %57, %58, %cst_33 {dimension_numbers = #tpu.dot_dimension_numbers<[1], [0], [0], [1], [0, 0, 1, 1], [], []>} : vector<8x32xf32>, vector<32x128xf32>, vector<8x128xf32> -> vector<8x128xf32>
    %c0_34 = arith.constant 0 : index
    %c0_35 = arith.constant 0 : index
    %60 = vector.load %arg13[%c0_34, %c0_35] : memref<1x128xf32, #tpu.memory_space<vmem>>, vector<1x128xf32>
    %61 = vector.broadcast %60 : vector<1x128xf32> to vector<8x128xf32>
    %62 = arith.addf %59, %61 : vector<8x128xf32>
    %cst_36 = arith.constant 0.000000e+00 : f32
    %63 = vector.broadcast %cst_36 : f32 to vector<8x128xf32>
    %64 = arith.maximumf %62, %63 : vector<8x128xf32>
    %c0_37 = arith.constant 0 : index
    %c0_38 = arith.constant 0 : index
    %65 = vector.load %arg14[%c0_37, %c0_38] : memref<128x32xf32, #tpu.memory_space<vmem>>, vector<128x32xf32>
    %cst_39 = arith.constant dense<0.000000e+00> : vector<8x32xf32>
    %66 = tpu.matmul %64, %65, %cst_39 {dimension_numbers = #tpu.dot_dimension_numbers<[1], [0], [0], [1], [0, 0, 1, 1], [], []>} : vector<8x128xf32>, vector<128x32xf32>, vector<8x32xf32> -> vector<8x32xf32>
    %c0_40 = arith.constant 0 : index
    %c0_41 = arith.constant 0 : index
    %67 = vector.load %arg15[%c0_40, %c0_41] : memref<1x32xf32, #tpu.memory_space<vmem>>, vector<1x32xf32>
    %68 = vector.broadcast %67 : vector<1x32xf32> to vector<8x32xf32>
    %69 = arith.addf %66, %68 : vector<8x32xf32>
    %70 = arith.addf %69, %57 : vector<8x32xf32>
    %c0_42 = arith.constant 0 : index
    %c0_43 = arith.constant 0 : index
    %71 = vector.load %arg16[%c0_42, %c0_43] : memref<1x32xf32, #tpu.memory_space<vmem>>, vector<1x32xf32>
    %c0_44 = arith.constant 0 : index
    %c0_45 = arith.constant 0 : index
    %72 = vector.load %arg17[%c0_44, %c0_45] : memref<1x32xf32, #tpu.memory_space<vmem>>, vector<1x32xf32>
    %cst_46 = arith.constant dense<0.000000e+00> : vector<8xf32>
    %73 = vector.multi_reduction <add>, %70, %cst_46 [1] : vector<8x32xf32> to vector<8xf32>
    %74 = vector.shape_cast %73 : vector<8xf32> to vector<8x1xf32>
    %cst_47 = arith.constant 3.200000e+01 : f32
    %75 = vector.broadcast %cst_47 : f32 to vector<8x1xf32>
    %76 = arith.divf %74, %75 : vector<8x1xf32>
    %77 = vector.broadcast %76 : vector<8x1xf32> to vector<8x32xf32>
    %78 = arith.subf %70, %77 : vector<8x32xf32>
    %79 = arith.mulf %78, %78 : vector<8x32xf32>
    %cst_48 = arith.constant dense<0.000000e+00> : vector<8xf32>
    %80 = vector.multi_reduction <add>, %79, %cst_48 [1] : vector<8x32xf32> to vector<8xf32>
    %81 = vector.shape_cast %80 : vector<8xf32> to vector<8x1xf32>
    %cst_49 = arith.constant 3.200000e+01 : f32
    %82 = vector.broadcast %cst_49 : f32 to vector<8x1xf32>
    %83 = arith.divf %81, %82 : vector<8x1xf32>
    %84 = vector.broadcast %76 : vector<8x1xf32> to vector<8x32xf32>
    %85 = arith.subf %70, %84 : vector<8x32xf32>
    %cst_50 = arith.constant 9.99999974E-6 : f32
    %86 = vector.broadcast %cst_50 : f32 to vector<8x1xf32>
    %87 = arith.addf %83, %86 : vector<8x1xf32>
    %88 = math.rsqrt %87 : vector<8x1xf32>
    %89 = vector.broadcast %88 : vector<8x1xf32> to vector<8x32xf32>
    %90 = arith.mulf %85, %89 : vector<8x32xf32>
    %91 = vector.broadcast %71 : vector<1x32xf32> to vector<8x32xf32>
    %92 = arith.mulf %90, %91 : vector<8x32xf32>
    %93 = vector.broadcast %72 : vector<1x32xf32> to vector<8x32xf32>
    %94 = arith.addf %92, %93 : vector<8x32xf32>
    %c0_51 = arith.constant 0 : index
    %c0_52 = arith.constant 0 : index
    %c0_53 = arith.constant 0 : index
    %95 = vector.load %arg18[%c0_51, %c0_52, %c0_53] : memref<1x8x32xf32, #tpu.memory_space<vmem>>, vector<1x8x32xf32>
    %96 = vector.shape_cast %95 : vector<1x8x32xf32> to vector<8x32xf32>
    %97 = vector.shape_cast %94 : vector<8x32xf32> to vector<1x8x32xf32>
    tpu.vector_store %arg18[%c0_51, %c0_52, %c0_53], %97 {strides = array<i32>} : memref<1x8x32xf32, #tpu.memory_space<vmem>>, vector<1x8x32xf32>,
    return
  }
  func.func @transform_0(%arg0: i32, %arg1: i32) -> (i32, i32, i32) {
    %c0_i32 = arith.constant 0 : i32
    %c0_i32_0 = arith.constant 0 : i32
    return %arg0, %arg1, %c0_i32 : i32, i32, i32
  }
  func.func @transform_1(%arg0: i32, %arg1: i32) -> (i32, i32, i32) {
    %c0_i32 = arith.constant 0 : i32
    %c0_i32_0 = arith.constant 0 : i32
    %c0_i32_1 = arith.constant 0 : i32
    return %arg0, %c0_i32, %c0_i32_0 : i32, i32, i32
  }
  func.func @transform_2(%arg0: i32, %arg1: i32) -> (i32, i32) {
    %c0_i32 = arith.constant 0 : i32
    %c0_i32_0 = arith.constant 0 : i32
    %c0_i32_1 = arith.constant 0 : i32
    return %c0_i32, %c0_i32_0 : i32, i32
  }
  func.func @transform_3(%arg0: i32, %arg1: i32) -> (i32, i32) {
    %c0_i32 = arith.constant 0 : i32
    %c0_i32_0 = arith.constant 0 : i32
    %c0_i32_1 = arith.constant 0 : i32
    return %c0_i32, %c0_i32_0 : i32, i32
  }
  func.func @transform_4(%arg0: i32, %arg1: i32) -> (i32, i32) {
    %c0_i32 = arith.constant 0 : i32
    %c0_i32_0 = arith.constant 0 : i32
    %c0_i32_1 = arith.constant 0 : i32
    return %c0_i32, %c0_i32_0 : i32, i32
  }
  func.func @transform_5(%arg0: i32, %arg1: i32) -> (i32, i32) {
    %c0_i32 = arith.constant 0 : i32
    %c0_i32_0 = arith.constant 0 : i32
    %c0_i32_1 = arith.constant 0 : i32
    return %c0_i32, %c0_i32_0 : i32, i32
  }
  func.func @transform_6(%arg0: i32, %arg1: i32) -> (i32, i32) {
    %c0_i32 = arith.constant 0 : i32
    %c0_i32_0 = arith.constant 0 : i32
    %c0_i32_1 = arith.constant 0 : i32
    return %c0_i32, %c0_i32_0 : i32, i32
  }
  func.func @transform_7(%arg0: i32, %arg1: i32) -> (i32, i32) {
    %c0_i32 = arith.constant 0 : i32
    %c0_i32_0 = arith.constant 0 : i32
    %c0_i32_1 = arith.constant 0 : i32
    return %c0_i32, %c0_i32_0 : i32, i32
  }
  func.func @transform_8(%arg0: i32, %arg1: i32) -> (i32, i32) {
    %c0_i32 = arith.constant 0 : i32
    %c0_i32_0 = arith.constant 0 : i32
    %c0_i32_1 = arith.constant 0 : i32
    return %c0_i32, %c0_i32_0 : i32, i32
  }
  func.func @transform_9(%arg0: i32, %arg1: i32) -> (i32, i32) {
    %c0_i32 = arith.constant 0 : i32
    %c0_i32_0 = arith.constant 0 : i32
    %c0_i32_1 = arith.constant 0 : i32
    return %c0_i32, %c0_i32_0 : i32, i32
  }
  func.func @transform_10(%arg0: i32, %arg1: i32) -> (i32, i32) {
    %c0_i32 = arith.constant 0 : i32
    %c0_i32_0 = arith.constant 0 : i32
    %c0_i32_1 = arith.constant 0 : i32
    return %c0_i32, %c0_i32_0 : i32, i32
  }
  func.func @transform_11(%arg0: i32, %arg1: i32) -> (i32, i32) {
    %c0_i32 = arith.constant 0 : i32
    %c0_i32_0 = arith.constant 0 : i32
    %c0_i32_1 = arith.constant 0 : i32
    return %c0_i32, %c0_i32_0 : i32, i32
  }
  func.func @transform_12(%arg0: i32, %arg1: i32) -> (i32, i32) {
    %c0_i32 = arith.constant 0 : i32
    %c0_i32_0 = arith.constant 0 : i32
    %c0_i32_1 = arith.constant 0 : i32
    return %c0_i32, %c0_i32_0 : i32, i32
  }
  func.func @transform_13(%arg0: i32, %arg1: i32) -> (i32, i32) {
    %c0_i32 = arith.constant 0 : i32
    %c0_i32_0 = arith.constant 0 : i32
    %c0_i32_1 = arith.constant 0 : i32
    return %c0_i32, %c0_i32_0 : i32, i32
  }
  func.func @transform_14(%arg0: i32, %arg1: i32) -> (i32, i32) {
    %c0_i32 = arith.constant 0 : i32
    %c0_i32_0 = arith.constant 0 : i32
    %c0_i32_1 = arith.constant 0 : i32
    return %c0_i32, %c0_i32_0 : i32, i32
  }
  func.func @transform_15(%arg0: i32, %arg1: i32) -> (i32, i32) {
    %c0_i32 = arith.constant 0 : i32
    %c0_i32_0 = arith.constant 0 : i32
    %c0_i32_1 = arith.constant 0 : i32
    return %c0_i32, %c0_i32_0 : i32, i32
  }
  func.func @transform_16(%arg0: i32, %arg1: i32) -> (i32, i32, i32) {
    %c0_i32 = arith.constant 0 : i32
    %c0_i32_0 = arith.constant 0 : i32
    return %arg0, %arg1, %c0_i32 : i32, i32, i32
  }
}

</mosaic_0001>

<bundles_post_ra>
// kernel: tpu_custom_call.1
= control target key start
LH: loop header
LB: loop body
LE: loop exit
PB: predicated region body
PF: predicated region fallthrough
CT: control target
= control target key end

     0   :  { %s3363_s0 = inlined_call_operand.vmem [shape: f32[2,8,32], index: 0, kind: input, shape index: {}]   ;;  %s3364_s1 = inlined_call_operand.vmem [shape: f32[2,8,32], index: 1, kind: input, shape index: {}]   ;;  %s3365_s2 = inlined_call_operand.vmem [shape: f32[32,32], index: 2, kind: input, shape index: {}]   ;;  %s3366_s3 = inlined_call_operand.vmem [shape: f32[1,32], index: 3, kind: input, shape index: {}]   ;;  %s3367_s4 = inlined_call_operand.vmem [shape: f32[32,64], index: 4, kind: input, shape index: {}]   ;;  %s3368_s5 = inlined_call_operand.vmem [shape: f32[1,64], index: 5, kind: input, shape index: {}]   ;;  %s3369_s6 = inlined_call_operand.vmem [shape: f32[32,32], index: 6, kind: input, shape index: {}]   ;;  %s3370_s7 = inlined_call_operand.vmem [shape: f32[1,32], index: 7, kind: input, shape index: {}]   ;;  %s3371_s8 = inlined_call_operand.vmem [shape: f32[1,32], index: 8, kind: input, shape index: {}]   ;;  %s3372_s9 = inlined_call_operand.vmem [shape: f32[1,32], index: 9, kind: input, shape index: {}]   ;;  %s3373_s10 = inlined_call_operand.vmem [shape: f32[32,128], index: 10, kind: input, shape index: {}]   ;;  %s3374_s11 = inlined_call_operand.vmem [shape: f32[1,128], index: 11, kind: input, shape index: {}]   ;;  %s3375_s12 = inlined_call_operand.vmem [shape: f32[128,32], index: 12, kind: input, shape index: {}]   ;;  %s3376_s13 = inlined_call_operand.vmem [shape: f32[1,32], index: 13, kind: input, shape index: {}]   ;;  %s3377_s14 = inlined_call_operand.vmem [shape: f32[1,32], index: 14, kind: input, shape index: {}]   ;;  %s3378_s15 = inlined_call_operand.vmem [shape: f32[1,32], index: 15, kind: input, shape index: {}]   ;;  %s3379_s16 = inlined_call_operand.hbm [shape: f32[2,8,32], index: 16, kind: output, shape index: {}]  }
   0x1   :  { %3384 = sst [smem:[#allocation12_spill]] %s3363_s0 }
   0x2   :  { %3385 = sst [smem:[#allocation13_spill]] %s3364_s1 }
   0x3   :  { %3386 = sst [smem:[#allocation14_spill]] %s3367_s4 }
   0x4   :  { %21 = vsyncpa [#allocation5], 0 }
   0x5   :  { %23 = vsyncpa [#allocation5 + $0x1], 0  ;;  %s2938_s21 = smov 0   ;;  %s2940_s22 = smov 0  }
   0x6   :  { %s2942_s23 = smov 0   ;;  %s2944_s24 = smov 0  }
   0x7   :  { %s2946_s25 = smov 0   ;;  %s2948_s26 = smov 0  }
   0x8 LB: > { %3387 = sst [smem:[#allocation7_spill]] %s2818_s21  ;;  %s2408_s27 = sadd.s32 4294967295, %s2838_s26   ;;  %s2838_s26 = sphi %s2948_s26, %s29_s26   ;;  %s2834_s25 = sphi %s2946_s25, %s3401_s25   ;;  %s2830_s24 = sphi %s2944_s24, %s3400_s24   ;;  %s2826_s23 = sphi %s2942_s23, %s3399_s23   ;;  %s2822_s22 = sphi %s2940_s22, %s3403_s22   ;;  %s2818_s21 = sphi %s2938_s21, %s3402_s21  }
   0x9   : > { %3388 = sst [smem:[#allocation8_spill]] %s2826_s23  ;;  %s2409_s28 = sadd.s32 4294967294, %s2838_s26  }
   0xa   : > { %3389 = sst [smem:[#allocation9_spill]] %s2834_s25  ;;  %s41_s29 = sadd.s32 1, %s2834_s25 }
   0xb   : > { %s398_s30 = sadd.s32 1, %s2826_s23  ;;  %p43_p0 = scmp.ge.s32.totalorder %s41_s29, 2 }
   0xc   : > { %p408_p1 = scmp.ne.s32.totalorder %s2826_s23, %s2822_s22  ;;  %p409_p2 = scmp.eq.s32.totalorder %s2408_s27, 1 }
   0xd   : > { %p414_p3 = scmp.ne.s32.totalorder %s2822_s22, %s2818_s21  ;;  %s3405_s29 = smov (%p43_p0, %s41_s29), 0 }
   0xe   : > { %3390 = sst [smem:[#allocation10_spill]] %s3405_s29  ;;  %p2978_p4 = por %p409_p2, %p408_p1 }
   0xf   : > { %p415_p5 = scmp.eq.s32.totalorder %s2409_s28, 1  ;;  %s393_s17 = ssub.s32 %s2834_s25, %s3405_s29 }
  0x10   : > { %p2412_p6 = scmp.ge.s32.totalorder %s2838_s26, 1  ;;  %p396_p7 = scmp.eq.s32.totalorder %s393_s17, 0 }
  0x11   : > { %p2985_p8 = por %p415_p5, %p414_p3  ;;  %p492_p9 = scmp.lt.s32.totalorder %s2838_s26, 3 }
  0x12   : > { %s2991_s19 = scalar_select %p396_p7, %s2826_s23, %s398_s30  }
  0x13   : > { %p493_p10 = pnand %p2412_p6, %p492_p9 }
  0x14   : > { %3393 = sst [smem:[#allocation11_spill]] %s2991_s19  ;;  %s3394_s4 = sld [smem:[#allocation14_spill]] (!%p493_p10)  ;;  %v2840_v3 = vmov (!%p493_p10), 0.0|0.0   ;;  %vm2841_vm0 = vmmov (!%p493_p10), 0   ;;  %v2842_v6 = vmov (!%p493_p10), 0.0   ;;  %v953_v8 = vld [vmem:[%s3365_s2] sm:$0xff] (!%p493_p10)  ;;  %v665_v26 = vlaneseq (!%p493_p10) }
  0x15   : > { %496 = sbr.rel (%p493_p10) target bundleno = 2570 (0xa0a), region = 84  ;;  %2625 = vmatprep.subr.bf16.mxu1 (!%p493_p10), %v2840_v3  ;;  %2514 = vmatprep.mubr.msk.f32.mxu1 (!%p493_p10), %vm2841_vm0, %v2842_v6  ;;  %p548_p11 = scmp.lt.s32.totalorder (!%p493_p10), %s2830_s24, 1  ;;  %v954_v9 = vld [vmem:[%s3365_s2 + $0x8] sm:$0xff] (!%p493_p10)  ;;  %vm576_vm1 = vcmask (!%p493_p10), 261120   ;;  %v955_v12 = vld [vmem:[%s3365_s2 + $0x10] sm:$0xff] (!%p493_p10)  ;;  %v956_v13 = vld [vmem:[%s3365_s2 + $0x18] sm:$0xff] (!%p493_p10) }
  0x16   : > { %2528 = vmatprep.subr.mxu0 (!%p493_p10), %v2842_v6  ;;  %2530 = vmatprep.mubr.msk.f32.mxu0 (!%p493_p10), %vm2841_vm0, %v2842_v6  ;;  %s3395_s1 = sld [smem:[#allocation13_spill]] (!%p493_p10)  ;;  %v2632_v11 = vpack.c.bf16 (!%p493_p10), %v954_v9, %v953_v8  ;;  %v2635_v14 = vpack.c.bf16 (!%p493_p10), %v956_v13, %v955_v12  ;;  %s3396_s25 = sld [smem:[#allocation12_spill]] (!%p493_p10)  ;;  %v2416_v16 = vld [vmem:[%s3368_s5] ss:$0 sm:$0xff] (!%p493_p10)  ;;  %v2846_v24 = vmov (!%p493_p10), 1983009808  }
  0x17   : > { %s2844_s17 = smov (!%p493_p10), 120   ;;  %v2422_v20 = vld [vmem:[%s3366_s3] ss:$0 sm:$0xff] (!%p493_p10)  ;;  %s2845_s20 = smov (!%p493_p10), 112   ;;  %v663_v25 = vunpack.c.l.s4 (!%p493_p10), %v2846_v24  ;;  %v2847_v27 = vmov (!%p493_p10), 1934713408  }
  0x18   : > { %v695_v28 = vunpack.c.l.s4 (!%p493_p10), %v2847_v27  ;;  %v666_v30 = vshrl.u32 (!%p493_p10), %v665_v26, 7  ;;  %vm944_vm2 = vcmask (!%p493_p10), 64512   ;;  %s2849_s29 = smov (!%p493_p10), 16   ;;  %vm1982_vm3 = vcmask (!%p493_p10), 130048  }
  0x19   : > { %v664_v29 = vunpack.c.0.s8 (!%p493_p10), %v663_v25  ;;  %vm1984_vm4 = vcmask (!%p493_p10), 195584  }
  0x1a   : > { %v565_v0 = vld [vmem:[%s3394_s4] sm:$0xff] (!%p493_p10)  ;;  %v566_v1 = vld [vmem:[%s3394_s4 + $0x8] sm:$0xff] (!%p493_p10)  ;;  %v567_v2 = vld [vmem:[%s3394_s4 + $0x10] sm:$0xff] (!%p493_p10)  ;;  %v696_v33 = vunpack.c.0.s8 (!%p493_p10), %v695_v28 }
  0x1b   : > { %v2626_v4 = vpack.c.bf16 (!%p493_p10), %v566_v1, %v565_v0  ;;  %v568_v5 = vld [vmem:[%s3394_s4 + $0x18] sm:$0xff] (!%p493_p10)  ;;  %v3059_v34 = vsub.s32 (!%p493_p10), %v664_v29, %v666_v30 }
  0x1c   : > { %v2629_v7 = vpack.c.bf16 %v568_v5, %v567_v2  ;;  %s549_s21 = scalar_select %p548_p11, %s2830_s24, 1  ;;  %v3071_v40 = vsub.s32 %v696_v33, %v666_v30 }
  0x1d   : > { %2627 = vmatpush3.bf16.msra.mxu1 %v2626_v4 }
  0x1e   : > { %2628 = vmatprep.subr.bf16.mxu1 %v2840_v3  ;;  %s2414_s28 = sshll.u32 %s549_s21, 3 }
  0x1f   : > { %s558_s4 = scalar_lea.vmem %s3395_s1, %s2414_s28  ;;  %s554_s27 = scalar_lea.vmem %s3396_s25, %s2414_s28 }
  0x20   : > { %v564_v10 = vld [vmem:[%s558_s4] sm:$0xff]  ;;  %s2843_s28 = smov 104   ;;  %s2848_s4 = smov 96  }
  0x21   : > { %2630 = vmatpush3.bf16.msra.mxu1 %v2629_v7  ;;  %v3037_v15 = vld [vmem:[%s554_s27] sm:$0xff]  ;;  %s2450_s25 = sshll.u32 %s2830_s24, 7  ;;  %s2852_s24 = smov [#allocation4]  }
  0x22   : > { %2631 = vmatprep.subr.bf16.mxu1 %v2840_v3  ;;  %s3315_s1 = scalar_lea.hbm %s3379_s16, %s2450_s25 }
  0x24   : > { %2515 = vmatmul.mubr.msk.f32.vlgmr.msra.gmra.mrb[0].mxu1 %vm576_vm1, %v564_v10 }
  0x25   : > { %2633 = vmatpush3.bf16.msra.mxu1 %v2632_v11  ;;  %2525 = vmatprep.mubr.msk.f32.mxu1 %vm2841_vm0, %v2842_v6 }
  0x26   : > { %2634 = vmatprep.subr.bf16.mxu1 %v2840_v3 }
  0x29   : > { %2636 = vmatpush3.bf16.msra.mxu1 %v2635_v14 }
  0x2a   : > { %2533 = vmatprep.subr.mxu1 %v2842_v6 }
  0x2c   : > { %2526 = vmatmul.mubr.msk.f32.vlgmr.msra.gmra.mrb[2].mxu1 %vm576_vm1, %v3037_v15 }
  0x2d   : > { %2535 = vmatprep.mubr.msk.f32.mxu1 %vm2841_vm0, %v2842_v6 }
  0xf7   : > { %v646_v17 = vpop.f32.mrb[0].mxu1 }
  0xf8   : > { %v3047_v18 = vadd.f32 %v2416_v16, %v646_v17  ;;  %v2516_v19 = vpop.f32.mrb[1].mxu1 }
  0xfa   : > { %657 = vrot.lane.b32.xlu1 %v3047_v18, %s2843_s28  ;;  %651 = vrot.lane.b32.xlu0 %v3047_v18, %s2844_s17 }
  0xfe   : > { %654 = vrot.lane.b32.xlu0 %v3047_v18, %s2845_s20 }
  0xff   : > { %v1034_v21 = vpop.f32.mrb[2].mxu1 }
 0x100   : > { %v1035_v22 = vadd.f32 %v2422_v20, %v1034_v21  ;;  %v2527_v23 = vpop.f32.mrb[3].mxu1 }
 0x102   : > { %1042 = vrot.lane.b32.xlu0 %v1035_v22, %s2845_s20  ;;  %1039 = vrot.lane.b32.xlu1 %v1035_v22, %s2844_s17  ;;  %s2850_s20 = smov 8   ;;  %s545_s17 = sand.u32 1, %s2822_s22  }
 0x103   : > { %s2413_s30 = sshll.u32 %s545_s17, 3 }
 0x104   : > { %s547_s27 = scalar_lea.vmem [#allocation4], %s2413_s30  ;;  %s2764_s30 = sshll.u32 %s2852_s24, 4  ;;  %s2765_s30 = int_to_ptr.vmem [resolvable:$false] %s2764_s30 }
 0x105   : > { %s2325_s23 = sshll.u32 %s547_s27, 4  ;;  %s3317_s23 = int_to_ptr.vmem [resolvable:$true] %s2325_s23 }
 0x106   : > { %1045 = vrot.lane.b32.xlu1 %v1035_v22, %s2843_s28  ;;  %p2767_p1 = scmp.lt.s32.totalorder %s3317_s23, %s2765_s30 }
 0x16c   : > { %v3055_v31 = vpop.permute.xlu1 %657  ;;  %v3057_v32 = vpop.permute.xlu0 %651 }
 0x16d   : > { %v676_v35 = vcombine.low %v3057_v32, %v3055_v31  ;;  %v677_v36 = vcombine.high %v3057_v32, %v3055_v31 }
 0x16f   : > { %v684_v41 = vrot.slane %v676_v35, %v3059_v34  ;;  %v691_v42 = vrot.slane %v677_v36, %v3059_v34 }
 0x170   : > { %v3065_v37 = vpop.permute.xlu0 %654 }
 0x171   : > { %v660_v38 = vcombine.low %v3047_v18, %v3065_v37  ;;  %v661_v39 = vcombine.high %v3047_v18, %v3065_v37 }
 0x173   : > { %v668_v43 = vrot.slane %v660_v38, %v3059_v34  ;;  %v675_v44 = vrot.slane %v661_v39, %v3059_v34 }
 0x174   : > { %v1040_v45 = vpop.permute.xlu1 %1039  ;;  %v1043_v50 = vpop.permute.xlu0 %1042 }
 0x175   : > { %v692_v46 = vcombine.low %v668_v43, %v684_v41  ;;  %v693_v47 = vcombine.high %v668_v43, %v684_v41  ;;  %v708_v48 = vcombine.low %v675_v44, %v691_v42  ;;  %v709_v49 = vcombine.high %v675_v44, %v691_v42 }
 0x176   : > { %v1048_v55 = vcombine.low %v1035_v22, %v1043_v50  ;;  %v1049_v56 = vcombine.high %v1035_v22, %v1043_v50 }
 0x177   : > { %v700_v51 = vrot.slane %v692_v46, %v3071_v40  ;;  %v707_v52 = vrot.slane %v693_v47, %v3071_v40  ;;  %v716_v53 = vrot.slane %v708_v48, %v3071_v40  ;;  %v723_v54 = vrot.slane %v709_v49, %v3071_v40 }
 0x178   : > { %v1046_v57 = vpop.permute.xlu1 %1045  ;;  %v1056_v5 = vrot.slane %v1048_v55, %v3059_v34  ;;  %v1063_v7 = vrot.slane %v1049_v56, %v3059_v34 }
 0x179   : > { %v728_v58 = vcombine.low %v700_v51, %v707_v52  ;;  %v2418_v59 = vcombine.high %v700_v51, %v707_v52  ;;  %v744_v60 = vcombine.low %v716_v53, %v723_v54  ;;  %v2419_v61 = vcombine.high %v716_v53, %v723_v54 }
 0x17a   : > { %v1064_v62 = vcombine.low %v1040_v45, %v1046_v57  ;;  %v1065_v63 = vcombine.high %v1040_v45, %v1046_v57 }
 0x17b   : > { %v735_v0 = vrot.slane %v728_v58, %v3059_v34  ;;  %v743_v1 = vrot.slane %v2418_v59, %v3059_v34  ;;  %v751_v2 = vrot.slane %v744_v60, %v3059_v34  ;;  %v759_v4 = vrot.slane %v2419_v61, %v3059_v34 }
 0x17c   : > { %v1072_v8 = vrot.slane %v1064_v62, %v3059_v34  ;;  %v1079_v9 = vrot.slane %v1065_v63, %v3059_v34 }
 0x17d   : > { %v760_v10 = vcombine.low %v735_v0, %v743_v1  ;;  %v761_v11 = vcombine.high %v735_v0, %v743_v1  ;;  %v776_v12 = vcombine.low %v751_v2, %v759_v4  ;;  %v777_v13 = vcombine.high %v751_v2, %v759_v4 }
 0x17e   : > { %v1080_v14 = vcombine.low %v1056_v5, %v1072_v8  ;;  %v1081_v16 = vcombine.high %v1056_v5, %v1072_v8  ;;  %v1096_v17 = vcombine.low %v1063_v7, %v1079_v9  ;;  %v1097_v19 = vcombine.high %v1063_v7, %v1079_v9 }
 0x17f   : > { %v768_v20 = vrot.slane %v760_v10, %v3071_v40  ;;  %v775_v21 = vrot.slane %v761_v11, %v3071_v40  ;;  %v784_v22 = vrot.slane %v776_v12, %v3071_v40  ;;  %v791_v23 = vrot.slane %v777_v13, %v3071_v40 }
 0x180   : > { %v1088_v24 = vrot.slane %v1080_v14, %v3071_v40  ;;  %v1095_v25 = vrot.slane %v1081_v16, %v3071_v40  ;;  %v1104_v26 = vrot.slane %v1096_v17, %v3071_v40  ;;  %v1111_v27 = vrot.slane %v1097_v19, %v3071_v40 }
 0x181   : > { %v792_v28 = vcombine.low %v768_v20, %v784_v22  ;;  %v793_v29 = vcombine.high %v768_v20, %v784_v22  ;;  %v794_v30 = vcombine.low %v775_v21, %v791_v23  ;;  %v795_v33 = vcombine.high %v775_v21, %v791_v23 }
 0x182   : > { %v1116_v35 = vcombine.low %v1088_v24, %v1095_v25  ;;  %v2424_v36 = vcombine.high %v1088_v24, %v1095_v25  ;;  %v1132_v38 = vcombine.low %v1104_v26, %v1111_v27  ;;  %v2425_v39 = vcombine.high %v1104_v26, %v1111_v27 }
 0x183   : > { %945 = vst.msk [vmem:[#allocation2] sm:$0xff] %vm944_vm2, %v792_v28  ;;  %946 = vst.msk [vmem:[#allocation2 + $0x8] sm:$0xff] %vm944_vm2, %v793_v29 }
 0x184   : > { %947 = vst.msk [vmem:[#allocation2 + $0x10] sm:$0xff] %vm944_vm2, %v794_v30  ;;  %948 = vst.msk [vmem:[#allocation2 + $0x18] sm:$0xff] %vm944_vm2, %v795_v33  ;;  %v1123_v41 = vrot.slane %v1116_v35, %v3059_v34  ;;  %v1131_v42 = vrot.slane %v2424_v36, %v3059_v34  ;;  %v1139_v43 = vrot.slane %v1132_v38, %v3059_v34 }
 0x185   : > { %v1147_v44 = vrot.slane %v2425_v39, %v3059_v34 }
 0x186   : > { %v1148_v45 = vcombine.low %v1123_v41, %v1131_v42  ;;  %v1149_v47 = vcombine.high %v1123_v41, %v1131_v42 }
 0x187   : > { %v1164_v46 = vcombine.low %v1139_v43, %v1147_v44  ;;  %v1165_v48 = vcombine.high %v1139_v43, %v1147_v44 }
 0x188   : > { %v1156_v49 = vrot.slane %v1148_v45, %v3071_v40  ;;  %v1163_v53 = vrot.slane %v1149_v47, %v3071_v40 }
 0x189   : > { %v1172_v50 = vrot.slane %v1164_v46, %v3071_v40  ;;  %v1179_v56 = vrot.slane %v1165_v48, %v3071_v40 }
 0x18a   : > { %v1184_v51 = vld [vmem:[#allocation2] sm:$0xff]  ;;  %v1185_v52 = vld [vmem:[#allocation2 + $0x8] sm:$0xff] }
 0x18b   : > { %2529 = vmatpush3.xpose.msk.msra.mxu0 %vm944_vm2, %v1184_v51  ;;  %2534 = vmatpush3.xpose.msk.msra.mxu1 %vm944_vm2, %v1185_v52  ;;  %v1180_v54 = vcombine.low %v1156_v49, %v1172_v50  ;;  %v1181_v55 = vcombine.high %v1156_v49, %v1172_v50  ;;  %v1186_v57 = vld [vmem:[#allocation2 + $0x10] sm:$0xff]  ;;  %v1187_v58 = vld [vmem:[#allocation2 + $0x18] sm:$0xff]  ;;  %v1182_v59 = vcombine.low %v1163_v53, %v1179_v56 }
 0x18c   : > { %2538 = vmatprep.subr.mxu0 %v2842_v6  ;;  %2543 = vmatprep.subr.mxu1 %v2842_v6  ;;  %v1183_v60 = vcombine.high %v1163_v53, %v1179_v56 }
 0x18e   : > { %2531 = vmatmul.mubr.msk.f32.vlgmr.msra.gmra.mrb[0].mxu0 %vm944_vm2, %v1180_v54  ;;  %2536 = vmatmul.mubr.msk.f32.vlgmr.msra.gmra.mrb[4].mxu1 %vm944_vm2, %v1181_v55 }
 0x18f   : > { %2539 = vmatpush3.xpose.msk.msra.mxu0 %vm944_vm2, %v1186_v57  ;;  %2544 = vmatpush3.xpose.msk.msra.mxu1 %vm944_vm2, %v1187_v58 }
 0x190   : > { %2540 = vmatprep.mubr.msk.f32.mxu0 %vm2841_vm0, %v2842_v6  ;;  %2545 = vmatprep.mubr.msk.f32.mxu1 %vm2841_vm0, %v2842_v6 }
 0x191   : > { %2548 = vmatprep.subr.mxu0 %v2842_v6  ;;  %2553 = vmatprep.subr.mxu1 %v2842_v6 }
 0x192   : > { %2541 = vmatmul.mubr.msk.f32.vlgmr.msra.gmra.mrb[2].mxu0 %vm944_vm2, %v1182_v59  ;;  %2546 = vmatmul.mubr.msk.f32.vlgmr.msra.gmra.mrb[6].mxu1 %vm944_vm2, %v1183_v60 }
 0x193   : > { %2550 = vmatprep.mubr.msk.f32.mxu0 %vm2841_vm0, %v2842_v6  ;;  %2555 = vmatprep.mubr.msk.f32.mxu1 %vm2841_vm0, %v2842_v6 }
 0x261   : > { %v1261_v61 = vpop.f32.mrb[0].mxu0  ;;  %v1337_v62 = vpop.f32.mrb[4].mxu1 }
 0x262   : > { %v2532_v63 = vpop.f32.mrb[1].mxu0  ;;  %v2537_v0 = vpop.f32.mrb[5].mxu1  ;;  %v1493_v1 = vsel %vm944_vm2, %v1261_v61, -inf  ;;  %v1496_v2 = vsel %vm944_vm2, %v1337_v62, -inf }
 0x263   : > { %1494 = vmax.xlane.f32.xlu0 %v1493_v1  ;;  %1497 = vmax.xlane.f32.xlu1 %v1496_v2 }
 0x265   : > { %v1413_v4 = vpop.f32.mrb[2].mxu0  ;;  %v1489_v5 = vpop.f32.mrb[6].mxu1 }
 0x266   : > { %v2542_v7 = vpop.f32.mrb[3].mxu0  ;;  %v2547_v8 = vpop.f32.mrb[7].mxu1  ;;  %v1499_v9 = vsel %vm944_vm2, %v1413_v4, -inf  ;;  %v1502_v10 = vsel %vm944_vm2, %v1489_v5, -inf }
 0x267   : > { %1500 = vmax.xlane.f32.xlu0 %v1499_v9 }
 0x26b   : > { %1503 = vmax.xlane.f32.xlu0 %v1502_v10 }
 0x274   : > { %796 = vrot.lane.b32.xlu1 %v3047_v18, %s2848_s4 }
 0x278   : > { %800 = vrot.lane.b32.xlu1 %v3065_v37, %s2848_s4 }
 0x27c   : > { %802 = vrot.lane.b32.xlu1 %v3055_v31, %s2848_s4 }
 0x281   : > { %798 = vrot.lane.b32.xlu0 %v3057_v32, %s2848_s4  ;;  %s2851_s4 = smov 24  }
 0x2f0   : > { %v1495_v11 = vpop.xlane.xlu0 %1494  ;;  %v1498_v12 = vpop.xlane.xlu1 %1497 }
 0x2f1   : > { %v1505_v13 = vsub.f32 %v1261_v61, %v1495_v11  ;;  %v1506_v14 = vsub.f32 %v1337_v62, %v1498_v12 }
 0x2f3   : > { %v1509_v16 = vmul.f32 1.442695, %v1505_v13  ;;  %v1511_v17 = vmul.f32 1.442695, %v1506_v14 }
 0x2f4   : > { %v1501_v19 = vpop.xlane.xlu0 %1500  ;;  %v797_v20 = vpop.permute.xlu1 %796 }
 0x2f5   : > { %2740 = vpow2.f32 %v1509_v16  ;;  %v1507_v21 = vsub.f32 %v1413_v4, %v1501_v19 }
 0x2f6   : > { %2742 = vpow2.f32 %v1511_v17 }
 0x2f7   : > { %v1513_v22 = vmul.f32 1.442695, %v1507_v21 }
 0x2f8   : > { %v801_v23 = vpop.permute.xlu1 %800  ;;  %v1504_v18 = vpop.xlane.xlu0 %1503 }
 0x2f9   : > { %2744 = vpow2.f32 %v1513_v22  ;;  %v1508_v37 = vsub.f32 %v1489_v5, %v1504_v18  ;;  %v808_v24 = vcombine.low %v797_v20, %v801_v23  ;;  %v809_v31 = vcombine.high %v797_v20, %v801_v23 }
 0x2fb   : > { %v1515_v25 = vmul.f32 1.442695, %v1508_v37  ;;  %v816_v30 = vrot.slane %v808_v24, %v3059_v34  ;;  %v823_v33 = vrot.slane %v809_v31, %v3059_v34 }
 0x2fc   : > { %v803_v32 = vpop.permute.xlu1 %802  ;;  %v799_v26 = vpop.permute.xlu0 %798 }
 0x2fd   : > { %2746 = vpow2.f32 %v1515_v25  ;;  %v824_v27 = vcombine.low %v799_v26, %v803_v32  ;;  %v825_v28 = vcombine.high %v799_v26, %v803_v32  ;;  %v1986_v26 = vld [vmem:[%s3369_s6] sm:$0xff] }
 0x2ff   : > { %v3137_v29 = vpop.eup %2740  ;;  %v832_v35 = vrot.slane %v824_v27, %v3059_v34  ;;  %v839_v36 = vrot.slane %v825_v28, %v3059_v34  ;;  %v1987_v27 = vld [vmem:[%s3369_s6 + $0x8] sm:$0xff] }
 0x300   : > { %v2743_v38 = vpop.eup %2742  ;;  %v1517_v39 = vsel %vm944_vm2, %v3137_v29, 0.0  ;;  %v2638_v28 = vpack.c.bf16 %v1987_v27, %v1986_v26 }
 0x301   : > { %v840_v41 = vcombine.low %v816_v30, %v832_v35  ;;  %v841_v42 = vcombine.high %v816_v30, %v832_v35  ;;  %v856_v43 = vcombine.low %v823_v33, %v839_v36  ;;  %v857_v44 = vcombine.high %v823_v33, %v839_v36  ;;  %1518 = vadd.xlane.f32.xlu0 %v1517_v39 }
 0x302   : > { %v1520_v45 = vsel %vm944_vm2, %v2743_v38, 0.0 }
 0x303   : > { %v2745_v46 = vpop.eup %2744  ;;  %v848_v47 = vrot.slane %v840_v41, %v3071_v40  ;;  %v855_v48 = vrot.slane %v841_v42, %v3071_v40  ;;  %v864_v49 = vrot.slane %v856_v43, %v3071_v40  ;;  %v871_v50 = vrot.slane %v857_v44, %v3071_v40  ;;  %1521 = vadd.xlane.f32.xlu1 %v1520_v45 }
 0x304   : > { %v1523_v51 = vsel %vm944_vm2, %v2745_v46, 0.0 }
 0x305   : > { %v876_v52 = vcombine.low %v848_v47, %v855_v48  ;;  %v2420_v53 = vcombine.high %v848_v47, %v855_v48  ;;  %v892_v54 = vcombine.low %v864_v49, %v871_v50  ;;  %v2421_v55 = vcombine.high %v864_v49, %v871_v50  ;;  %1524 = vadd.xlane.f32.xlu0 %v1523_v51 }
 0x307   : > { %v2747_v56 = vpop.eup %2746  ;;  %v883_v57 = vrot.slane %v876_v52, %v3059_v34  ;;  %v891_v58 = vrot.slane %v2420_v53, %v3059_v34  ;;  %v899_v59 = vrot.slane %v892_v54, %v3059_v34  ;;  %v907_v60 = vrot.slane %v2421_v55, %v3059_v34  ;;  %v1988_v54 = vld [vmem:[%s3369_s6 + $0x10] sm:$0xff]  ;;  %v1989_v55 = vld [vmem:[%s3369_s6 + $0x18] sm:$0xff] }
 0x308   : > { %v1526_v61 = vsel %vm944_vm2, %v2747_v56, 0.0 }
 0x309   : > { %v908_v62 = vcombine.low %v883_v57, %v891_v58  ;;  %v909_v63 = vcombine.high %v883_v57, %v891_v58  ;;  %v924_v0 = vcombine.low %v899_v59, %v907_v60  ;;  %v925_v1 = vcombine.high %v899_v59, %v907_v60  ;;  %1527 = vadd.xlane.f32.xlu0 %v1526_v61 }
 0x30a   : > { %v2641_v60 = vpack.c.bf16 %v1989_v55, %v1988_v54  ;;  %v2195_v54 = vld [vmem:[%s3375_s12 + $0x48] sm:$0xff] }
 0x30b   : > { %v916_v2 = vrot.slane %v908_v62, %v3071_v40  ;;  %v923_v4 = vrot.slane %v909_v63, %v3071_v40  ;;  %v932_v5 = vrot.slane %v924_v0, %v3071_v40  ;;  %v939_v7 = vrot.slane %v925_v1, %v3071_v40 }
 0x30d   : > { %v940_v8 = vcombine.low %v916_v2, %v932_v5  ;;  %v941_v9 = vcombine.high %v916_v2, %v932_v5  ;;  %v942_v10 = vcombine.low %v923_v4, %v939_v7  ;;  %v943_v11 = vcombine.high %v923_v4, %v939_v7 }
 0x30f   : > { %949 = vst.msk [vmem:[#allocation3] sm:$0xff] %vm944_vm2, %v940_v8  ;;  %950 = vst.msk [vmem:[#allocation3 + $0x8] sm:$0xff] %vm944_vm2, %v941_v9 }
 0x310   : > { %951 = vst.msk [vmem:[#allocation3 + $0x10] sm:$0xff] %vm944_vm2, %v942_v10  ;;  %952 = vst.msk [vmem:[#allocation3 + $0x18] sm:$0xff] %vm944_vm2, %v943_v11 }
 0x316   : > { %v1537_v12 = vld [vmem:[#allocation3] sm:$0xff]  ;;  %v1538_v13 = vld [vmem:[#allocation3 + $0x8] sm:$0xff] }
 0x317   : > { %2549 = vmatpush3.msra.mxu0 %v1537_v12  ;;  %2554 = vmatpush3.msra.mxu1 %v1538_v13  ;;  %v1539_v18 = vld [vmem:[#allocation3 + $0x10] sm:$0xff]  ;;  %v1540_v31 = vld [vmem:[#allocation3 + $0x18] sm:$0xff] }
 0x318   : > { %2558 = vmatprep.subr.mxu0 %v2842_v6  ;;  %2563 = vmatprep.subr.mxu1 %v2842_v6 }
 0x38e   : > { %v1519_v14 = vpop.xlane.xlu0 %1518 }
 0x38f   : > { %2748 = vrcp.f32 %v1519_v14 }
 0x390   : > { %v1522_v16 = vpop.xlane.xlu1 %1521 }
 0x391   : > { %2750 = vrcp.f32 %v1522_v16 }
 0x392   : > { %v1525_v17 = vpop.xlane.xlu0 %1524 }
 0x393   : > { %2752 = vrcp.f32 %v1525_v17 }
 0x396   : > { %v1528_v19 = vpop.xlane.xlu0 %1527 }
 0x397   : > { %2754 = vrcp.f32 %v1528_v19 }
 0x399   : > { %v2749_v20 = vpop.eup %2748 }
 0x39a   : > { %v1533_v21 = vmul.f32 %v2749_v20, %v3137_v29 }
 0x39b   : > { %v2751_v22 = vpop.eup %2750 }
 0x39c   : > { %v1534_v23 = vmul.f32 %v2751_v22, %v2743_v38  ;;  %2551 = vmatmul.mubr.msk.f32.vlgmr.msra.gmra.mrb[4].mxu0 %vm944_vm2, %v1533_v21 }
 0x39d   : > { %v2753_v37 = vpop.eup %2752  ;;  %2559 = vmatpush3.msra.mxu0 %v1539_v18  ;;  %2560 = vmatprep.mubr.msk.f32.mxu0 %vm2841_vm0, %v2842_v6 }
 0x39e   : > { %v1535_v24 = vmul.f32 %v2753_v37, %v2745_v46  ;;  %2556 = vmatmul.mubr.msk.f32.vlgmr.msra.gmra.mrb[8].mxu1 %vm944_vm2, %v1534_v23  ;;  %2649 = vmatprep.subr.bf16.mxu0 %v2840_v3 }
 0x39f   : > { %2564 = vmatpush3.msra.mxu1 %v1540_v31  ;;  %2565 = vmatprep.mubr.msk.f32.mxu1 %vm2841_vm0, %v2842_v6 }
 0x3a0   : > { %2561 = vmatmul.mubr.msk.f32.vlgmr.msra.gmra.mrb[6].mxu0 %vm944_vm2, %v1535_v24  ;;  %2637 = vmatprep.subr.bf16.mxu1 %v2840_v3 }
 0x3a1   : > { %v2755_v25 = vpop.eup %2754  ;;  %2622 = vmatprep.mubr.msk.f32.mxu0 %vm2841_vm0, %v2842_v6 }
 0x3a2   : > { %v1536_v32 = vmul.f32 %v2755_v25, %v2747_v56 }
 0x3a4   : > { %2566 = vmatmul.mubr.msk.f32.vlgmr.msra.gmra.mrb[10].mxu1 %vm944_vm2, %v1536_v32 }
 0x3a5   : > { %2576 = vmatprep.mubr.msk.f32.mxu1 %vm2841_vm0, %v2842_v6  ;;  %2639 = vmatpush3.bf16.msra.mxu1 %v2638_v28 }
 0x3a6   : > { %2640 = vmatprep.subr.bf16.mxu1 %v2840_v3 }
 0x3a9   : > { %2642 = vmatpush3.bf16.msra.mxu1 %v2641_v60  ;;  %v2199_v60 = vld [vmem:[%s3375_s12 + $0x68] sm:$0xff] }
 0x3aa   : > { %2643 = vmatprep.subr.bf16.mxu1 %v2840_v3 }
 0x46f   : > { %v1610_v29 = vpop.f32.mrb[4].mxu0 }
 0x470   : > { %v2552_v30 = vpop.f32.mrb[5].mxu0 }
 0x471   : > { %v1683_v33 = vpop.f32.mrb[8].mxu1 }
 0x472   : > { %v2557_v35 = vpop.f32.mrb[9].mxu1 }
 0x473   : > { %v1756_v36 = vpop.f32.mrb[6].mxu0  ;;  %v2102_v35 = vld [vmem:[%s3373_s10 + $0x8] sm:$0xff] }
 0x474   : > { %v1833_v38 = vcombine.low %v1610_v29, %v1756_v36  ;;  %v1834_v39 = vcombine.high %v1610_v29, %v1756_v36  ;;  %v2562_v41 = vpop.f32.mrb[7].mxu0 }
 0x475   : > { %v2186_v41 = vld [vmem:[%s3375_s12] sm:$0xff] }
 0x476   : > { %v1841_v46 = vrot.slane %v1833_v38, %v3059_v34  ;;  %v1848_v47 = vrot.slane %v1834_v39, %v3059_v34  ;;  %v2104_v38 = vld [vmem:[%s3373_s10 + $0x18] sm:$0xff] }
 0x477   : > { %v1829_v42 = vpop.f32.mrb[10].mxu1 }
 0x478   : > { %v1849_v43 = vcombine.low %v1683_v33, %v1829_v42  ;;  %v1850_v44 = vcombine.high %v1683_v33, %v1829_v42  ;;  %v2567_v45 = vpop.f32.mrb[11].mxu1  ;;  %v2187_v42 = vld [vmem:[%s3375_s12 + $0x8] sm:$0xff] }
 0x479   : > { %v2189_v45 = vld [vmem:[%s3375_s12 + $0x18] sm:$0xff] }
 0x47a   : > { %v1857_v48 = vrot.slane %v1849_v43, %v3059_v34  ;;  %v1864_v49 = vrot.slane %v1850_v44, %v3059_v34  ;;  %v2188_v43 = vld [vmem:[%s3375_s12 + $0x10] sm:$0xff]  ;;  %v2650_v44 = vpack.c.bf16 %v2187_v42, %v2186_v41 }
 0x47c   : > { %v1865_v50 = vcombine.low %v1841_v46, %v1857_v48  ;;  %v1866_v51 = vcombine.high %v1841_v46, %v1857_v48  ;;  %v1881_v52 = vcombine.low %v1848_v47, %v1864_v49  ;;  %v1882_v53 = vcombine.high %v1848_v47, %v1864_v49  ;;  %2651 = vmatpush3.bf16.msra.mxu0 %v2650_v44  ;;  %v2190_v47 = vld [vmem:[%s3375_s12 + $0x20] sm:$0xff]  ;;  %v2191_v48 = vld [vmem:[%s3375_s12 + $0x28] sm:$0xff] }
 0x47d   : > { %v2653_v46 = vpack.c.bf16 %v2189_v45, %v2188_v43  ;;  %2652 = vmatprep.subr.bf16.mxu0 %v2840_v3  ;;  %v2656_v49 = vpack.c.bf16 %v2191_v48, %v2190_v47 }
 0x47e   : > { %v1873_v56 = vrot.slane %v1865_v50, %v3071_v40  ;;  %v1880_v57 = vrot.slane %v1866_v51, %v3071_v40  ;;  %v1889_v58 = vrot.slane %v1881_v52, %v3071_v40  ;;  %v1896_v59 = vrot.slane %v1882_v53, %v3071_v40  ;;  %v2192_v50 = vld [vmem:[%s3375_s12 + $0x30] sm:$0xff]  ;;  %v2193_v51 = vld [vmem:[%s3375_s12 + $0x38] sm:$0xff]  ;;  %v2194_v53 = vld [vmem:[%s3375_s12 + $0x40] sm:$0xff] }
 0x47f   : > { %v2659_v52 = vpack.c.bf16 %v2193_v51, %v2192_v50  ;;  %v2662_v55 = vpack.c.bf16 %v2195_v54, %v2194_v53 }
 0x480   : > { %v1901_v61 = vcombine.low %v1873_v56, %v1880_v57  ;;  %v2438_v62 = vcombine.high %v1873_v56, %v1880_v57  ;;  %v1917_v63 = vcombine.low %v1889_v58, %v1896_v59  ;;  %v2439_v0 = vcombine.high %v1889_v58, %v1896_v59  ;;  %2654 = vmatpush3.bf16.msra.mxu0 %v2653_v46  ;;  %v2196_v56 = vld [vmem:[%s3375_s12 + $0x50] sm:$0xff]  ;;  %v2197_v57 = vld [vmem:[%s3375_s12 + $0x58] sm:$0xff]  ;;  %v2198_v59 = vld [vmem:[%s3375_s12 + $0x60] sm:$0xff] }
 0x481   : > { %2655 = vmatprep.subr.bf16.mxu0 %v2840_v3  ;;  %v2665_v58 = vpack.c.bf16 %v2197_v57, %v2196_v56 }
 0x482   : > { %v1908_v1 = vrot.slane %v1901_v61, %v3059_v34  ;;  %v1916_v2 = vrot.slane %v2438_v62, %v3059_v34  ;;  %v1924_v4 = vrot.slane %v1917_v63, %v3059_v34  ;;  %v1932_v5 = vrot.slane %v2439_v0, %v3059_v34 }
 0x483   : > { %v2668_v61 = vpack.c.bf16 %v2199_v60, %v2198_v59 }
 0x484   : > { %v1934_v7 = vcombine.high %v1908_v1, %v1916_v2  ;;  %v1950_v8 = vcombine.high %v1924_v4, %v1932_v5  ;;  %v1933_v9 = vcombine.low %v1908_v1, %v1916_v2  ;;  %v1949_v10 = vcombine.low %v1924_v4, %v1932_v5  ;;  %2657 = vmatpush3.bf16.msra.mxu0 %v2656_v49  ;;  %v2442_v2 = vld [vmem:[%s3371_s8] ss:$0 sm:$0xff] }
 0x485   : > { %2658 = vmatprep.subr.bf16.mxu0 %v2840_v3  ;;  %v2443_v5 = vld [vmem:[%s3372_s9] ss:$0 sm:$0xff] }
 0x486   : > { %v1948_v11 = vrot.slane %v1934_v7, %v3071_v40  ;;  %v1964_v12 = vrot.slane %v1950_v8, %v3071_v40  ;;  %v1941_v13 = vrot.slane %v1933_v9, %v3071_v40  ;;  %v1957_v14 = vrot.slane %v1949_v10, %v3071_v40  ;;  %v2440_v40 = vld [vmem:[%s3370_s7] ss:$0 sm:$0xff]  ;;  %v2201_v9 = vld [vmem:[%s3375_s12 + $0x78] sm:$0xff] }
 0x488   : > { %v1967_v16 = vcombine.low %v1948_v11, %v1964_v12  ;;  %v1966_v17 = vcombine.high %v1941_v13, %v1957_v14  ;;  %v1968_v19 = vcombine.high %v1948_v11, %v1964_v12  ;;  %v1965_v20 = vcombine.low %v1941_v13, %v1957_v14  ;;  %2660 = vmatpush3.bf16.msra.mxu0 %v2659_v52  ;;  %v2444_v11 = vld [vmem:[%s3374_s11] ss:$0 sm:$0xff] }
 0x489   : > { %2661 = vmatprep.subr.bf16.mxu0 %v2840_v3 }
 0x48a   : > { %1974 = vrot.lane.b32.xlu0 %v1967_v16, %s2849_s29  ;;  %1970 = vrot.lane.b32.xlu1 %v1966_v17, %s2850_s20  ;;  %v2446_v17 = vld [vmem:[%s3376_s13] ss:$0 sm:$0xff]  ;;  %s2311_s29 = scalar_lea.sflag [#allocation5], %s545_s17  ;;  %s2760_s20 = scalar_lea.vmem %s3317_s23, 128 }
 0x48b   : > { %p2761_p12 = scmp.ne.s32.totalorder %s3317_s23, %s2760_s20 }
 0x48c   : > { %2663 = vmatpush3.bf16.msra.mxu0 %v2662_v55 }
 0x48d   : > { %2664 = vmatprep.subr.bf16.mxu0 %v2840_v3  ;;  %p2762_p13 = pnand %p2761_p12, %p2978_p4 }
 0x48e   : > { %1978 = vrot.lane.b32.xlu1 %v1968_v19, %s2851_s4  ;;  %s2766_s4 = scalar_lea.vmem %s2765_s30, 256 }
 0x48f   : > { %p2763_p0 = pneg %p2762_p13  ;;  %p2768_p2 = scmp.lt.s32.totalorder %s2766_s4, %s2760_s20 }
 0x490   : > { %2666 = vmatpush3.bf16.msra.mxu0 %v2665_v58 }
 0x491   : > { %2667 = vmatprep.subr.bf16.mxu0 %v2840_v3  ;;  %p2769_p3 = por %p2768_p2, %p2767_p1 }
 0x493   : > { %p2770_p5 = pnand %p2769_p3, %p2763_p0 }
 0x494   : > { %2669 = vmatpush3.bf16.msra.mxu0 %v2668_v61 }
 0x495   : > { %2670 = vmatprep.subr.bf16.mxu0 %v2840_v3 }
 0x4fc   : > { %v1971_v34 = vpop.permute.xlu1 %1970  ;;  %v1975_v21 = vpop.permute.xlu0 %1974 }
 0x4fd   : > { %v1981_v22 = vsel %vm944_vm2, %v1965_v20, %v1971_v34 }
 0x4fe   : > { %v1983_v18 = vsel %vm1982_vm3, %v1981_v22, %v1975_v21 }
 0x500   : > { %v1979_v23 = vpop.permute.xlu1 %1978 }
 0x501   : > { %v1985_v37 = vsel %vm1984_vm4, %v1983_v18, %v1979_v23 }
 0x502   : > { %2577 = vmatmul.mubr.msk.f32.vlgmr.msra.gmra.mrb[12].mxu1 %vm576_vm1, %v1985_v37 }
 0x503   : > { %2587 = vmatprep.mubr.msk.f32.mxu1 %vm2841_vm0, %v2842_v6  ;;  %v2101_v6 = vld [vmem:[%s3373_s10] sm:$0xff] }
 0x504   : > { %v2644_v36 = vpack.c.bf16 %v2102_v35, %v2101_v6 }
 0x506   : > { %2645 = vmatpush3.bf16.msra.mxu1 %v2644_v36 }
 0x507   : > { %2646 = vmatprep.subr.bf16.mxu1 %v2840_v3  ;;  %v2200_v3 = vld [vmem:[%s3375_s12 + $0x70] sm:$0xff] }
 0x508   : > { %v2671_v10 = vpack.c.bf16 %v2201_v9, %v2200_v3 }
 0x50a   : > { %2672 = vmatpush3.bf16.msra.mxu0 %v2671_v10 }
 0x5d5   : > { %v2066_v24 = vpop.f32.mrb[12].mxu1 }
 0x5d6   : > { %v2067_v31 = vadd.f32 %v2440_v40, %v2066_v24  ;;  %v2578_v25 = vpop.f32.mrb[13].mxu1 }
 0x5d8   : > { %v2070_v32 = vadd.f32 %v2067_v31, %v3037_v15  ;;  %v2103_v15 = vld [vmem:[%s3373_s10 + $0x10] sm:$0xff] }
 0x5d9   : > { %v2647_v39 = vpack.c.bf16 %v2104_v38, %v2103_v15 }
 0x5da   : > { %v2073_v26 = vsel %vm576_vm1, %v2070_v32, 0.0 }
 0x5db   : > { %2074 = vadd.xlane.f32.xlu1 %v2073_v26  ;;  %2648 = vmatpush3.bf16.msra.mxu1 %v2647_v39 }
 0x668   : > { %v2075_v27 = vpop.xlane.xlu1 %2074 }
 0x669   : > { %v2077_v28 = vmul.f32 0.03125, %v2075_v27  ;;  %v2447_v27 = vld [vmem:[%s3377_s14] ss:$0 sm:$0xff] }
 0x66b   : > { %v2078_v29 = vsub.f32 %v2070_v32, %v2077_v28 }
 0x66d   : > { %v2079_v30 = vmul.f32 %v2078_v29, %v2078_v29 }
 0x66f   : > { %v2080_v33 = vsel %vm576_vm1, %v2079_v30, 0.0 }
 0x670   : > { %2081 = vadd.xlane.f32.xlu0 %v2080_v33 }
 0x6fd   : > { %v2082_v62 = vpop.xlane.xlu0 %2081 }
 0x6fe   : > { %v2083_v63 = vmul.f32 0.03125, %v2082_v62 }
 0x700   : > { %v2084_v0 = vadd.f32 1e-05, %v2083_v63 }
 0x702   : > { %2756 = vrsqrt.f32 %v2084_v0 }
 0x70c   : > { %v2757_v1 = vpop.eup %2756 }
 0x70d   : > { %v2086_v4 = vmul.f32 %v2757_v1, %v2078_v29  ;;  %v2448_v29 = vld [vmem:[%s3378_s15] ss:$0 sm:$0xff] }
 0x70f   : > { %v2093_v7 = vmul.f32 %v2442_v2, %v2086_v4 }
 0x711   : > { %v2100_v8 = vadd.f32 %v2443_v5, %v2093_v7 }
 0x713   : > { %2588 = vmatmul.mubr.msk.f32.vlgmr.msra.gmra.mrb[14].mxu1 %vm576_vm1, %v2100_v8 }
 0x7e6   : > { %v2181_v12 = vpop.f32.mrb[14].mxu1 }
 0x7e7   : > { %v2182_v13 = vadd.f32 %v2444_v11, %v2181_v12  ;;  %v2589_v14 = vpop.f32.mrb[15].mxu1 }
 0x7e9   : > { %v2185_v16 = vmax.f32 %v2182_v13, 0.0 }
 0x7eb   : > { %2623 = vmatmul.mubr.f32.vlgmr.msra.gmra.mrb[8].mxu0 %v2185_v16 }
 0x8be   : > { %v2275_v19 = vpop.f32.mrb[8].mxu0 }
 0x8bf   : > { %v2276_v20 = vadd.f32 %v2446_v17, %v2275_v19  ;;  %v2624_v34 = vpop.f32.mrb[9].mxu0 }
 0x8c1   : > { %v2279_v21 = vadd.f32 %v2276_v20, %v2100_v8 }
 0x8c3   : > { %v2282_v22 = vsel %vm576_vm1, %v2279_v21, 0.0 }
 0x8c4   : > { %2283 = vadd.xlane.f32.xlu0 %v2282_v22 }
 0x951   : > { %v2284_v23 = vpop.xlane.xlu0 %2283 }
 0x952   : > { %v2285_v18 = vmul.f32 0.03125, %v2284_v23 }
 0x954   : > { %v2286_v37 = vsub.f32 %v2279_v21, %v2285_v18 }
 0x956   : > { %v2287_v40 = vmul.f32 %v2286_v37, %v2286_v37 }
 0x958   : > { %v2288_v24 = vsel %vm576_vm1, %v2287_v40, 0.0 }
 0x959   : > { %2289 = vadd.xlane.f32.xlu1 %v2288_v24 }
 0x9e6   : > { %v2290_v31 = vpop.xlane.xlu1 %2289 }
 0x9e7   : > { %v2291_v25 = vmul.f32 0.03125, %v2290_v31 }
 0x9e9   : > { %v2292_v32 = vadd.f32 1e-05, %v2291_v25 }
 0x9eb   : > { %2758 = vrsqrt.f32 %v2292_v32 }
 0x9f5   : > { %v2759_v26 = vpop.eup %2758 }
 0x9f6   : > { %v2294_v28 = vmul.f32 %v2759_v26, %v2286_v37 }
 0x9f8   : > { %v2301_v30 = vmul.f32 %v2447_v27, %v2294_v28 }
 0x9fa   : > { %v2308_v33 = vadd.f32 %v2448_v29, %v2301_v30 }
 0x9fc   : > { %2309 = vst.msk [vmem:[%s547_s27] sm:$0xff] %vm576_vm1, %v2308_v33 }
 0x9fd   : > { %2773 = shalt.err (!%p2770_p5)
}
 0x9fe   : > { %s2774_s17 = scalar_lea.hbm %s3315_s1, 128  ;;  %s2778_s27 = scalar_lea.hbm %s3379_s16, 256 }
 0x9ff   : > { %p2775_p6 = scmp.ne.s32.totalorder %s3315_s1, %s2774_s17  ;;  %p2779_p10 = scmp.lt.u32.totalorder %s3315_s1, %s3379_s16 }
 0xa00   : > { %p2780_p11 = scmp.lt.u32.totalorder %s2778_s27, %s2774_s17  ;;  %p2782_p13 = scmp.lt.u32.totalorder %s2774_s17, %s3315_s1 }
 0xa01   : > { %p2776_p7 = pnand %p2775_p6, %p2978_p4 }
 0xa02   : > { %p2781_p12 = por %p2780_p11, %p2779_p10 }
 0xa03   : > { %p2777_p9 = pneg %p2776_p7 }
 0xa04   : > { %p2783_p0 = por %p2782_p13, %p2781_p12 }
 0xa06   : > { %p2784_p1 = pnand %p2783_p0, %p2777_p9 }
 0xa08   : > { %2787 = shalt.err (!%p2784_p1)
}
 0xa09   : > { %2673 = dma.vmem_to_hbm [thread:$0]  (%p2978_p4), %s3317_s23, 128, %s3315_s1, %s2311_s29  }
 0xa0a PF: > { %s3397_s20 = sld [smem:[#allocation7_spill]]  ;;  %p2679_p2 = scmp.ge.s32.totalorder %s2838_s26, 2 }
 0xa0c   : > { %p2676_p3 = pnand %p2679_p2, %p2985_p8 }
 0xa10   : > { %s2337_s24 = sand.u32 1, %s3397_s20  }
 0xa11   : > { %s2338_s30 = scalar_lea.sflag [#allocation5], %s2337_s24 }
 0xa12   : > { %2813 = dma.done.wait (!%p2676_p3), %s2338_s30, 128  }
 0xa13   : > { %2815 = vsyncadd (!%p2676_p3), %s2338_s30, 4294967168  ;;  %s29_s26 = sadd.s32 1, %s2838_s26   ;;  %s3398_s4 = sld [smem:[#allocation8_spill]] }
 0xa14   : > { %p26_p5 = scmp.ge.s32.totalorder %s29_s26, 4   ;;  %s3399_s23 = sld [smem:[#allocation11_spill]] }
 0xa15   : > { %s3400_s24 = sld [smem:[#allocation9_spill]]  ;;  %s3401_s25 = sld [smem:[#allocation10_spill]] }
 0xa16   : > { %s3402_s21 = smov %s2822_s22  ;;  %28 = sbr.rel (!%p26_p5) target bundleno = 8 (0x8), region = 126 }
 0xa19   : > { %s3403_s22 = smov %s3398_s4 }
 0xa1d   :  { %2343 = vsyncpa [#allocation5], 1 }
 0xa1e   :  { %2345 = vsyncpa [#allocation5 + $0x1], 1 }

// kernel: tpu_custom_call.1
= control target key start
LH: loop header
LB: loop body
LE: loop exit
PB: predicated region body
PF: predicated region fallthrough
CT: control target
= control target key end

     0   :  { %s3363_s0 = inlined_call_operand.vmem [shape: f32[2,8,32], index: 0, kind: input, shape index: {}]   ;;  %s3364_s1 = inlined_call_operand.vmem [shape: f32[2,8,32], index: 1, kind: input, shape index: {}]   ;;  %s3365_s2 = inlined_call_operand.vmem [shape: f32[32,32], index: 2, kind: input, shape index: {}]   ;;  %s3366_s3 = inlined_call_operand.vmem [shape: f32[1,32], index: 3, kind: input, shape index: {}]   ;;  %s3367_s4 = inlined_call_operand.vmem [shape: f32[32,64], index: 4, kind: input, shape index: {}]   ;;  %s3368_s5 = inlined_call_operand.vmem [shape: f32[1,64], index: 5, kind: input, shape index: {}]   ;;  %s3369_s6 = inlined_call_operand.vmem [shape: f32[32,32], index: 6, kind: input, shape index: {}]   ;;  %s3370_s7 = inlined_call_operand.vmem [shape: f32[1,32], index: 7, kind: input, shape index: {}]   ;;  %s3371_s8 = inlined_call_operand.vmem [shape: f32[1,32], index: 8, kind: input, shape index: {}]   ;;  %s3372_s9 = inlined_call_operand.vmem [shape: f32[1,32], index: 9, kind: input, shape index: {}]   ;;  %s3373_s10 = inlined_call_operand.vmem [shape: f32[32,128], index: 10, kind: input, shape index: {}]   ;;  %s3374_s11 = inlined_call_operand.vmem [shape: f32[1,128], index: 11, kind: input, shape index: {}]   ;;  %s3375_s12 = inlined_call_operand.vmem [shape: f32[128,32], index: 12, kind: input, shape index: {}]   ;;  %s3376_s13 = inlined_call_operand.vmem [shape: f32[1,32], index: 13, kind: input, shape index: {}]   ;;  %s3377_s14 = inlined_call_operand.vmem [shape: f32[1,32], index: 14, kind: input, shape index: {}]   ;;  %s3378_s15 = inlined_call_operand.vmem [shape: f32[1,32], index: 15, kind: input, shape index: {}]   ;;  %s3379_s16 = inlined_call_operand.hbm [shape: f32[2,8,32], index: 16, kind: output, shape index: {}]  }
   0x1   :  { %3384 = sst [smem:[#allocation12_spill]] %s3363_s0 }
   0x2   :  { %3385 = sst [smem:[#allocation13_spill]] %s3364_s1 }
   0x3   :  { %3386 = sst [smem:[#allocation14_spill]] %s3367_s4 }
   0x4   :  { %21 = vsyncpa [#allocation5], 0 }
   0x5   :  { %23 = vsyncpa [#allocation5 + $0x1], 0  ;;  %s2938_s21 = smov 0   ;;  %s2940_s22 = smov 0  }
   0x6   :  { %s2942_s23 = smov 0   ;;  %s2944_s24 = smov 0  }
   0x7   :  { %s2946_s25 = smov 0   ;;  %s2948_s26 = smov 0  }
   0x8 LB: > { %3387 = sst [smem:[#allocation7_spill]] %s2818_s21  ;;  %s2408_s27 = sadd.s32 4294967295, %s2838_s26   ;;  %s2838_s26 = sphi %s2948_s26, %s29_s26   ;;  %s2834_s25 = sphi %s2946_s25, %s3401_s25   ;;  %s2830_s24 = sphi %s2944_s24, %s3400_s24   ;;  %s2826_s23 = sphi %s2942_s23, %s3399_s23   ;;  %s2822_s22 = sphi %s2940_s22, %s3403_s22   ;;  %s2818_s21 = sphi %s2938_s21, %s3402_s21  }
   0x9   : > { %3388 = sst [smem:[#allocation8_spill]] %s2826_s23  ;;  %s2409_s28 = sadd.s32 4294967294, %s2838_s26  }
   0xa   : > { %3389 = sst [smem:[#allocation9_spill]] %s2834_s25  ;;  %s41_s29 = sadd.s32 1, %s2834_s25 }
   0xb   : > { %s398_s30 = sadd.s32 1, %s2826_s23  ;;  %p43_p0 = scmp.ge.s32.totalorder %s41_s29, 2 }
   0xc   : > { %p408_p1 = scmp.ne.s32.totalorder %s2826_s23, %s2822_s22  ;;  %p409_p2 = scmp.eq.s32.totalorder %s2408_s27, 1 }
   0xd   : > { %p414_p3 = scmp.ne.s32.totalorder %s2822_s22, %s2818_s21  ;;  %s3405_s29 = smov (%p43_p0, %s41_s29), 0 }
   0xe   : > { %3390 = sst [smem:[#allocation10_spill]] %s3405_s29  ;;  %p2978_p4 = por %p409_p2, %p408_p1 }
   0xf   : > { %p415_p5 = scmp.eq.s32.totalorder %s2409_s28, 1  ;;  %s393_s17 = ssub.s32 %s2834_s25, %s3405_s29 }
  0x10   : > { %p2412_p6 = scmp.ge.s32.totalorder %s2838_s26, 1  ;;  %p396_p7 = scmp.eq.s32.totalorder %s393_s17, 0 }
  0x11   : > { %p2985_p8 = por %p415_p5, %p414_p3  ;;  %p492_p9 = scmp.lt.s32.totalorder %s2838_s26, 3 }
  0x12   : > { %s2991_s19 = scalar_select %p396_p7, %s2826_s23, %s398_s30  }
  0x13   : > { %p493_p10 = pnand %p2412_p6, %p492_p9 }
  0x14   : > { %3393 = sst [smem:[#allocation11_spill]] %s2991_s19  ;;  %s3394_s4 = sld [smem:[#allocation14_spill]] (!%p493_p10)  ;;  %v2840_v3 = vmov (!%p493_p10), 0.0|0.0   ;;  %vm2841_vm0 = vmmov (!%p493_p10), 0   ;;  %v2842_v6 = vmov (!%p493_p10), 0.0   ;;  %v953_v8 = vld [vmem:[%s3365_s2] sm:$0xff] (!%p493_p10)  ;;  %v665_v26 = vlaneseq (!%p493_p10) }
  0x15   : > { %496 = sbr.rel (%p493_p10) target bundleno = 2570 (0xa0a), region = 84  ;;  %2625 = vmatprep.subr.bf16.mxu1 (!%p493_p10), %v2840_v3  ;;  %2514 = vmatprep.mubr.msk.f32.mxu1 (!%p493_p10), %vm2841_vm0, %v2842_v6  ;;  %p548_p11 = scmp.lt.s32.totalorder (!%p493_p10), %s2830_s24, 1  ;;  %v954_v9 = vld [vmem:[%s3365_s2 + $0x8] sm:$0xff] (!%p493_p10)  ;;  %vm576_vm1 = vcmask (!%p493_p10), 261120   ;;  %v955_v12 = vld [vmem:[%s3365_s2 + $0x10] sm:$0xff] (!%p493_p10)  ;;  %v956_v13 = vld [vmem:[%s3365_s2 + $0x18] sm:$0xff] (!%p493_p10) }
  0x16   : > { %2528 = vmatprep.subr.mxu0 (!%p493_p10), %v2842_v6  ;;  %2530 = vmatprep.mubr.msk.f32.mxu0 (!%p493_p10), %vm2841_vm0, %v2842_v6  ;;  %s3395_s1 = sld [smem:[#allocation13_spill]] (!%p493_p10)  ;;  %v2632_v11 = vpack.c.bf16 (!%p493_p10), %v954_v9, %v953_v8  ;;  %v2635_v14 = vpack.c.bf16 (!%p493_p10), %v956_v13, %v955_v12  ;;  %s3396_s25 = sld [smem:[#allocation12_spill]] (!%p493_p10)  ;;  %v2416_v16 = vld [vmem:[%s3368_s5] ss:$0 sm:$0xff] (!%p493_p10)  ;;  %v2846_v24 = vmov (!%p493_p10), 1983009808  }
  0x17   : > { %s2844_s17 = smov (!%p493_p10), 120   ;;  %v2422_v20 = vld [vmem:[%s3366_s3] ss:$0 sm:$0xff] (!%p493_p10)  ;;  %s2845_s20 = smov (!%p493_p10), 112   ;;  %v663_v25 = vunpack.c.l.s4 (!%p493_p10), %v2846_v24  ;;  %v2847_v27 = vmov (!%p493_p10), 1934713408  }
  0x18   : > { %v695_v28 = vunpack.c.l.s4 (!%p493_p10), %v2847_v27  ;;  %v666_v30 = vshrl.u32 (!%p493_p10), %v665_v26, 7  ;;  %vm944_vm2 = vcmask (!%p493_p10), 64512   ;;  %s2849_s29 = smov (!%p493_p10), 16   ;;  %vm1982_vm3 = vcmask (!%p493_p10), 130048  }
  0x19   : > { %v664_v29 = vunpack.c.0.s8 (!%p493_p10), %v663_v25  ;;  %vm1984_vm4 = vcmask (!%p493_p10), 195584  }
  0x1a   : > { %v565_v0 = vld [vmem:[%s3394_s4] sm:$0xff] (!%p493_p10)  ;;  %v566_v1 = vld [vmem:[%s3394_s4 + $0x8] sm:$0xff] (!%p493_p10)  ;;  %v567_v2 = vld [vmem:[%s3394_s4 + $0x10] sm:$0xff] (!%p493_p10)  ;;  %v696_v33 = vunpack.c.0.s8 (!%p493_p10), %v695_v28 }
  0x1b   : > { %v2626_v4 = vpack.c.bf16 (!%p493_p10), %v566_v1, %v565_v0  ;;  %v568_v5 = vld [vmem:[%s3394_s4 + $0x18] sm:$0xff] (!%p493_p10)  ;;  %v3059_v34 = vsub.s32 (!%p493_p10), %v664_v29, %v666_v30 }
  0x1c   : > { %v2629_v7 = vpack.c.bf16 %v568_v5, %v567_v2  ;;  %s549_s21 = scalar_select %p548_p11, %s2830_s24, 1  ;;  %v3071_v40 = vsub.s32 %v696_v33, %v666_v30 }
  0x1d   : > { %2627 = vmatpush3.bf16.msra.mxu1 %v2626_v4 }
  0x1e   : > { %2628 = vmatprep.subr.bf16.mxu1 %v2840_v3  ;;  %s2414_s28 = sshll.u32 %s549_s21, 3 }
  0x1f   : > { %s558_s4 = scalar_lea.vmem %s3395_s1, %s2414_s28  ;;  %s554_s27 = scalar_lea.vmem %s3396_s25, %s2414_s28 }
  0x20   : > { %v564_v10 = vld [vmem:[%s558_s4] sm:$0xff]  ;;  %s2843_s28 = smov 104   ;;  %s2848_s4 = smov 96  }
  0x21   : > { %2630 = vmatpush3.bf16.msra.mxu1 %v2629_v7  ;;  %v3037_v15 = vld [vmem:[%s554_s27] sm:$0xff]  ;;  %s2450_s25 = sshll.u32 %s2830_s24, 7  ;;  %s2852_s24 = smov [#allocation4]  }
  0x22   : > { %2631 = vmatprep.subr.bf16.mxu1 %v2840_v3  ;;  %s3315_s1 = scalar_lea.hbm %s3379_s16, %s2450_s25 }
  0x24   : > { %2515 = vmatmul.mubr.msk.f32.vlgmr.msra.gmra.mrb[0].mxu1 %vm576_vm1, %v564_v10 }
  0x25   : > { %2633 = vmatpush3.bf16.msra.mxu1 %v2632_v11  ;;  %2525 = vmatprep.mubr.msk.f32.mxu1 %vm2841_vm0, %v2842_v6 }
  0x26   : > { %2634 = vmatprep.subr.bf16.mxu1 %v2840_v3 }
  0x29   : > { %2636 = vmatpush3.bf16.msra.mxu1 %v2635_v14 }
  0x2a   : > { %2533 = vmatprep.subr.mxu1 %v2842_v6 }
  0x2c   : > { %2526 = vmatmul.mubr.msk.f32.vlgmr.msra.gmra.mrb[2].mxu1 %vm576_vm1, %v3037_v15 }
  0x2d   : > { %2535 = vmatprep.mubr.msk.f32.mxu1 %vm2841_vm0, %v2842_v6 }
  0xf7   : > { %v646_v17 = vpop.f32.mrb[0].mxu1 }
  0xf8   : > { %v3047_v18 = vadd.f32 %v2416_v16, %v646_v17  ;;  %v2516_v19 = vpop.f32.mrb[1].mxu1 }
  0xfa   : > { %657 = vrot.lane.b32.xlu1 %v3047_v18, %s2843_s28  ;;  %651 = vrot.lane.b32.xlu0 %v3047_v18, %s2844_s17 }
  0xfe   : > { %654 = vrot.lane.b32.xlu0 %v3047_v18, %s2845_s20 }
  0xff   : > { %v1034_v21 = vpop.f32.mrb[2].mxu1 }
 0x100   : > { %v1035_v22 = vadd.f32 %v2422_v20, %v1034_v21  ;;  %v2527_v23 = vpop.f32.mrb[3].mxu1 }
 0x102   : > { %1042 = vrot.lane.b32.xlu0 %v1035_v22, %s2845_s20  ;;  %1039 = vrot.lane.b32.xlu1 %v1035_v22, %s2844_s17  ;;  %s2850_s20 = smov 8   ;;  %s545_s17 = sand.u32 1, %s2822_s22  }
 0x103   : > { %s2413_s30 = sshll.u32 %s545_s17, 3 }
 0x104   : > { %s547_s27 = scalar_lea.vmem [#allocation4], %s2413_s30  ;;  %s2764_s30 = sshll.u32 %s2852_s24, 4  ;;  %s2765_s30 = int_to_ptr.vmem [resolvable:$false] %s2764_s30 }
 0x105   : > { %s2325_s23 = sshll.u32 %s547_s27, 4  ;;  %s3317_s23 = int_to_ptr.vmem [resolvable:$true] %s2325_s23 }
 0x106   : > { %1045 = vrot.lane.b32.xlu1 %v1035_v22, %s2843_s28  ;;  %p2767_p1 = scmp.lt.s32.totalorder %s3317_s23, %s2765_s30 }
 0x16c   : > { %v3055_v31 = vpop.permute.xlu1 %657  ;;  %v3057_v32 = vpop.permute.xlu0 %651 }
 0x16d   : > { %v676_v35 = vcombine.low %v3057_v32, %v3055_v31  ;;  %v677_v36 = vcombine.high %v3057_v32, %v3055_v31 }
 0x16f   : > { %v684_v41 = vrot.slane %v676_v35, %v3059_v34  ;;  %v691_v42 = vrot.slane %v677_v36, %v3059_v34 }
 0x170   : > { %v3065_v37 = vpop.permute.xlu0 %654 }
 0x171   : > { %v660_v38 = vcombine.low %v3047_v18, %v3065_v37  ;;  %v661_v39 = vcombine.high %v3047_v18, %v3065_v37 }
 0x173   : > { %v668_v43 = vrot.slane %v660_v38, %v3059_v34  ;;  %v675_v44 = vrot.slane %v661_v39, %v3059_v34 }
 0x174   : > { %v1040_v45 = vpop.permute.xlu1 %1039  ;;  %v1043_v50 = vpop.permute.xlu0 %1042 }
 0x175   : > { %v692_v46 = vcombine.low %v668_v43, %v684_v41  ;;  %v693_v47 = vcombine.high %v668_v43, %v684_v41  ;;  %v708_v48 = vcombine.low %v675_v44, %v691_v42  ;;  %v709_v49 = vcombine.high %v675_v44, %v691_v42 }
 0x176   : > { %v1048_v55 = vcombine.low %v1035_v22, %v1043_v50  ;;  %v1049_v56 = vcombine.high %v1035_v22, %v1043_v50 }
 0x177   : > { %v700_v51 = vrot.slane %v692_v46, %v3071_v40  ;;  %v707_v52 = vrot.slane %v693_v47, %v3071_v40  ;;  %v716_v53 = vrot.slane %v708_v48, %v3071_v40  ;;  %v723_v54 = vrot.slane %v709_v49, %v3071_v40 }
 0x178   : > { %v1046_v57 = vpop.permute.xlu1 %1045  ;;  %v1056_v5 = vrot.slane %v1048_v55, %v3059_v34  ;;  %v1063_v7 = vrot.slane %v1049_v56, %v3059_v34 }
 0x179   : > { %v728_v58 = vcombine.low %v700_v51, %v707_v52  ;;  %v2418_v59 = vcombine.high %v700_v51, %v707_v52  ;;  %v744_v60 = vcombine.low %v716_v53, %v723_v54  ;;  %v2419_v61 = vcombine.high %v716_v53, %v723_v54 }
 0x17a   : > { %v1064_v62 = vcombine.low %v1040_v45, %v1046_v57  ;;  %v1065_v63 = vcombine.high %v1040_v45, %v1046_v57 }
 0x17b   : > { %v735_v0 = vrot.slane %v728_v58, %v3059_v34  ;;  %v743_v1 = vrot.slane %v2418_v59, %v3059_v34  ;;  %v751_v2 = vrot.slane %v744_v60, %v3059_v34  ;;  %v759_v4 = vrot.slane %v2419_v61, %v3059_v34 }
 0x17c   : > { %v1072_v8 = vrot.slane %v1064_v62, %v3059_v34  ;;  %v1079_v9 = vrot.slane %v1065_v63, %v3059_v34 }
 0x17d   : > { %v760_v10 = vcombine.low %v735_v0, %v743_v1  ;;  %v761_v11 = vcombine.high %v735_v0, %v743_v1  ;;  %v776_v12 = vcombine.low %v751_v2, %v759_v4  ;;  %v777_v13 = vcombine.high %v751_v2, %v759_v4 }
 0x17e   : > { %v1080_v14 = vcombine.low %v1056_v5, %v1072_v8  ;;  %v1081_v16 = vcombine.high %v1056_v5, %v1072_v8  ;;  %v1096_v17 = vcombine.low %v1063_v7, %v1079_v9  ;;  %v1097_v19 = vcombine.high %v1063_v7, %v1079_v9 }
 0x17f   : > { %v768_v20 = vrot.slane %v760_v10, %v3071_v40  ;;  %v775_v21 = vrot.slane %v761_v11, %v3071_v40  ;;  %v784_v22 = vrot.slane %v776_v12, %v3071_v40  ;;  %v791_v23 = vrot.slane %v777_v13, %v3071_v40 }
 0x180   : > { %v1088_v24 = vrot.slane %v1080_v14, %v3071_v40  ;;  %v1095_v25 = vrot.slane %v1081_v16, %v3071_v40  ;;  %v1104_v26 = vrot.slane %v1096_v17, %v3071_v40  ;;  %v1111_v27 = vrot.slane %v1097_v19, %v3071_v40 }
 0x181   : > { %v792_v28 = vcombine.low %v768_v20, %v784_v22  ;;  %v793_v29 = vcombine.high %v768_v20, %v784_v22  ;;  %v794_v30 = vcombine.low %v775_v21, %v791_v23  ;;  %v795_v33 = vcombine.high %v775_v21, %v791_v23 }
 0x182   : > { %v1116_v35 = vcombine.low %v1088_v24, %v1095_v25  ;;  %v2424_v36 = vcombine.high %v1088_v24, %v1095_v25  ;;  %v1132_v38 = vcombine.low %v1104_v26, %v1111_v27  ;;  %v2425_v39 = vcombine.high %v1104_v26, %v1111_v27 }
 0x183   : > { %945 = vst.msk [vmem:[#allocation2] sm:$0xff] %vm944_vm2, %v792_v28  ;;  %946 = vst.msk [vmem:[#allocation2 + $0x8] sm:$0xff] %vm944_vm2, %v793_v29 }
 0x184   : > { %947 = vst.msk [vmem:[#allocation2 + $0x10] sm:$0xff] %vm944_vm2, %v794_v30  ;;  %948 = vst.msk [vmem:[#allocation2 + $0x18] sm:$0xff] %vm944_vm2, %v795_v33  ;;  %v1123_v41 = vrot.slane %v1116_v35, %v3059_v34  ;;  %v1131_v42 = vrot.slane %v2424_v36, %v3059_v34  ;;  %v1139_v43 = vrot.slane %v1132_v38, %v3059_v34 }
 0x185   : > { %v1147_v44 = vrot.slane %v2425_v39, %v3059_v34 }
 0x186   : > { %v1148_v45 = vcombine.low %v1123_v41, %v1131_v42  ;;  %v1149_v47 = vcombine.high %v1123_v41, %v1131_v42 }
 0x187   : > { %v1164_v46 = vcombine.low %v1139_v43, %v1147_v44  ;;  %v1165_v48 = vcombine.high %v1139_v43, %v1147_v44 }
 0x188   : > { %v1156_v49 = vrot.slane %v1148_v45, %v3071_v40  ;;  %v1163_v53 = vrot.slane %v1149_v47, %v3071_v40 }
 0x189   : > { %v1172_v50 = vrot.slane %v1164_v46, %v3071_v40  ;;  %v1179_v56 = vrot.slane %v1165_v48, %v3071_v40 }
 0x18a   : > { %v1184_v51 = vld [vmem:[#allocation2] sm:$0xff]  ;;  %v1185_v52 = vld [vmem:[#allocation2 + $0x8] sm:$0xff] }
 0x18b   : > { %2529 = vmatpush3.xpose.msk.msra.mxu0 %vm944_vm2, %v1184_v51  ;;  %2534 = vmatpush3.xpose.msk.msra.mxu1 %vm944_vm2, %v1185_v52  ;;  %v1180_v54 = vcombine.low %v1156_v49, %v1172_v50  ;;  %v1181_v55 = vcombine.high %v1156_v49, %v1172_v50  ;;  %v1186_v57 = vld [vmem:[#allocation2 + $0x10] sm:$0xff]  ;;  %v1187_v58 = vld [vmem:[#allocation2 + $0x18] sm:$0xff]  ;;  %v1182_v59 = vcombine.low %v1163_v53, %v1179_v56 }
 0x18c   : > { %2538 = vmatprep.subr.mxu0 %v2842_v6  ;;  %2543 = vmatprep.subr.mxu1 %v2842_v6  ;;  %v1183_v60 = vcombine.high %v1163_v53, %v1179_v56 }
 0x18e   : > { %2531 = vmatmul.mubr.msk.f32.vlgmr.msra.gmra.mrb[0].mxu0 %vm944_vm2, %v1180_v54  ;;  %2536 = vmatmul.mubr.msk.f32.vlgmr.msra.gmra.mrb[4].mxu1 %vm944_vm2, %v1181_v55 }
 0x18f   : > { %2539 = vmatpush3.xpose.msk.msra.mxu0 %vm944_vm2, %v1186_v57  ;;  %2544 = vmatpush3.xpose.msk.msra.mxu1 %vm944_vm2, %v1187_v58 }
 0x190   : > { %2540 = vmatprep.mubr.msk.f32.mxu0 %vm2841_vm0, %v2842_v6  ;;  %2545 = vmatprep.mubr.msk.f32.mxu1 %vm2841_vm0, %v2842_v6 }
 0x191   : > { %2548 = vmatprep.subr.mxu0 %v2842_v6  ;;  %2553 = vmatprep.subr.mxu1 %v2842_v6 }
 0x192   : > { %2541 = vmatmul.mubr.msk.f32.vlgmr.msra.gmra.mrb[2].mxu0 %vm944_vm2, %v1182_v59  ;;  %2546 = vmatmul.mubr.msk.f32.vlgmr.msra.gmra.mrb[6].mxu1 %vm944_vm2, %v1183_v60 }
 0x193   : > { %2550 = vmatprep.mubr.msk.f32.mxu0 %vm2841_vm0, %v2842_v6  ;;  %2555 = vmatprep.mubr.msk.f32.mxu1 %vm2841_vm0, %v2842_v6 }
 0x261   : > { %v1261_v61 = vpop.f32.mrb[0].mxu0  ;;  %v1337_v62 = vpop.f32.mrb[4].mxu1 }
 0x262   : > { %v2532_v63 = vpop.f32.mrb[1].mxu0  ;;  %v2537_v0 = vpop.f32.mrb[5].mxu1  ;;  %v1493_v1 = vsel %vm944_vm2, %v1261_v61, -inf  ;;  %v1496_v2 = vsel %vm944_vm2, %v1337_v62, -inf }
 0x263   : > { %1494 = vmax.xlane.f32.xlu0 %v1493_v1  ;;  %1497 = vmax.xlane.f32.xlu1 %v1496_v2 }
 0x265   : > { %v1413_v4 = vpop.f32.mrb[2].mxu0  ;;  %v1489_v5 = vpop.f32.mrb[6].mxu1 }
 0x266   : > { %v2542_v7 = vpop.f32.mrb[3].mxu0  ;;  %v2547_v8 = vpop.f32.mrb[7].mxu1  ;;  %v1499_v9 = vsel %vm944_vm2, %v1413_v4, -inf  ;;  %v1502_v10 = vsel %vm944_vm2, %v1489_v5, -inf }
 0x267   : > { %1500 = vmax.xlane.f32.xlu0 %v1499_v9 }
 0x26b   : > { %1503 = vmax.xlane.f32.xlu0 %v1502_v10 }
 0x274   : > { %796 = vrot.lane.b32.xlu1 %v3047_v18, %s2848_s4 }
 0x278   : > { %800 = vrot.lane.b32.xlu1 %v3065_v37, %s2848_s4 }
 0x27c   : > { %802 = vrot.lane.b32.xlu1 %v3055_v31, %s2848_s4 }
 0x281   : > { %798 = vrot.lane.b32.xlu0 %v3057_v32, %s2848_s4  ;;  %s2851_s4 = smov 24  }
 0x2f0   : > { %v1495_v11 = vpop.xlane.xlu0 %1494  ;;  %v1498_v12 = vpop.xlane.xlu1 %1497 }
 0x2f1   : > { %v1505_v13 = vsub.f32 %v1261_v61, %v1495_v11  ;;  %v1506_v14 = vsub.f32 %v1337_v62, %v1498_v12 }
 0x2f3   : > { %v1509_v16 = vmul.f32 1.442695, %v1505_v13  ;;  %v1511_v17 = vmul.f32 1.442695, %v1506_v14 }
 0x2f4   : > { %v1501_v19 = vpop.xlane.xlu0 %1500  ;;  %v797_v20 = vpop.permute.xlu1 %796 }
 0x2f5   : > { %2740 = vpow2.f32 %v1509_v16  ;;  %v1507_v21 = vsub.f32 %v1413_v4, %v1501_v19 }
 0x2f6   : > { %2742 = vpow2.f32 %v1511_v17 }
 0x2f7   : > { %v1513_v22 = vmul.f32 1.442695, %v1507_v21 }
 0x2f8   : > { %v801_v23 = vpop.permute.xlu1 %800  ;;  %v1504_v18 = vpop.xlane.xlu0 %1503 }
 0x2f9   : > { %2744 = vpow2.f32 %v1513_v22  ;;  %v1508_v37 = vsub.f32 %v1489_v5, %v1504_v18  ;;  %v808_v24 = vcombine.low %v797_v20, %v801_v23  ;;  %v809_v31 = vcombine.high %v797_v20, %v801_v23 }
 0x2fb   : > { %v1515_v25 = vmul.f32 1.442695, %v1508_v37  ;;  %v816_v30 = vrot.slane %v808_v24, %v3059_v34  ;;  %v823_v33 = vrot.slane %v809_v31, %v3059_v34 }
 0x2fc   : > { %v803_v32 = vpop.permute.xlu1 %802  ;;  %v799_v26 = vpop.permute.xlu0 %798 }
 0x2fd   : > { %2746 = vpow2.f32 %v1515_v25  ;;  %v824_v27 = vcombine.low %v799_v26, %v803_v32  ;;  %v825_v28 = vcombine.high %v799_v26, %v803_v32  ;;  %v1986_v26 = vld [vmem:[%s3369_s6] sm:$0xff] }
 0x2ff   : > { %v3137_v29 = vpop.eup %2740  ;;  %v832_v35 = vrot.slane %v824_v27, %v3059_v34  ;;  %v839_v36 = vrot.slane %v825_v28, %v3059_v34  ;;  %v1987_v27 = vld [vmem:[%s3369_s6 + $0x8] sm:$0xff] }
 0x300   : > { %v2743_v38 = vpop.eup %2742  ;;  %v1517_v39 = vsel %vm944_vm2, %v3137_v29, 0.0  ;;  %v2638_v28 = vpack.c.bf16 %v1987_v27, %v1986_v26 }
 0x301   : > { %v840_v41 = vcombine.low %v816_v30, %v832_v35  ;;  %v841_v42 = vcombine.high %v816_v30, %v832_v35  ;;  %v856_v43 = vcombine.low %v823_v33, %v839_v36  ;;  %v857_v44 = vcombine.high %v823_v33, %v839_v36  ;;  %1518 = vadd.xlane.f32.xlu0 %v1517_v39 }
 0x302   : > { %v1520_v45 = vsel %vm944_vm2, %v2743_v38, 0.0 }
 0x303   : > { %v2745_v46 = vpop.eup %2744  ;;  %v848_v47 = vrot.slane %v840_v41, %v3071_v40  ;;  %v855_v48 = vrot.slane %v841_v42, %v3071_v40  ;;  %v864_v49 = vrot.slane %v856_v43, %v3071_v40  ;;  %v871_v50 = vrot.slane %v857_v44, %v3071_v40  ;;  %1521 = vadd.xlane.f32.xlu1 %v1520_v45 }
 0x304   : > { %v1523_v51 = vsel %vm944_vm2, %v2745_v46, 0.0 }
 0x305   : > { %v876_v52 = vcombine.low %v848_v47, %v855_v48  ;;  %v2420_v53 = vcombine.high %v848_v47, %v855_v48  ;;  %v892_v54 = vcombine.low %v864_v49, %v871_v50  ;;  %v2421_v55 = vcombine.high %v864_v49, %v871_v50  ;;  %1524 = vadd.xlane.f32.xlu0 %v1523_v51 }
 0x307   : > { %v2747_v56 = vpop.eup %2746  ;;  %v883_v57 = vrot.slane %v876_v52, %v3059_v34  ;;  %v891_v58 = vrot.slane %v2420_v53, %v3059_v34  ;;  %v899_v59 = vrot.slane %v892_v54, %v3059_v34  ;;  %v907_v60 = vrot.slane %v2421_v55, %v3059_v34  ;;  %v1988_v54 = vld [vmem:[%s3369_s6 + $0x10] sm:$0xff]  ;;  %v1989_v55 = vld [vmem:[%s3369_s6 + $0x18] sm:$0xff] }
 0x308   : > { %v1526_v61 = vsel %vm944_vm2, %v2747_v56, 0.0 }
 0x309   : > { %v908_v62 = vcombine.low %v883_v57, %v891_v58  ;;  %v909_v63 = vcombine.high %v883_v57, %v891_v58  ;;  %v924_v0 = vcombine.low %v899_v59, %v907_v60  ;;  %v925_v1 = vcombine.high %v899_v59, %v907_v60  ;;  %1527 = vadd.xlane.f32.xlu0 %v1526_v61 }
 0x30a   : > { %v2641_v60 = vpack.c.bf16 %v1989_v55, %v1988_v54  ;;  %v2195_v54 = vld [vmem:[%s3375_s12 + $0x48] sm:$0xff] }
 0x30b   : > { %v916_v2 = vrot.slane %v908_v62, %v3071_v40  ;;  %v923_v4 = vrot.slane %v909_v63, %v3071_v40  ;;  %v932_v5 = vrot.slane %v924_v0, %v3071_v40  ;;  %v939_v7 = vrot.slane %v925_v1, %v3071_v40 }
 0x30d   : > { %v940_v8 = vcombine.low %v916_v2, %v932_v5  ;;  %v941_v9 = vcombine.high %v916_v2, %v932_v5  ;;  %v942_v10 = vcombine.low %v923_v4, %v939_v7  ;;  %v943_v11 = vcombine.high %v923_v4, %v939_v7 }
 0x30f   : > { %949 = vst.msk [vmem:[#allocation3] sm:$0xff] %vm944_vm2, %v940_v8  ;;  %950 = vst.msk [vmem:[#allocation3 + $0x8] sm:$0xff] %vm944_vm2, %v941_v9 }
 0x310   : > { %951 = vst.msk [vmem:[#allocation3 + $0x10] sm:$0xff] %vm944_vm2, %v942_v10  ;;  %952 = vst.msk [vmem:[#allocation3 + $0x18] sm:$0xff] %vm944_vm2, %v943_v11 }
 0x316   : > { %v1537_v12 = vld [vmem:[#allocation3] sm:$0xff]  ;;  %v1538_v13 = vld [vmem:[#allocation3 + $0x8] sm:$0xff] }
 0x317   : > { %2549 = vmatpush3.msra.mxu0 %v1537_v12  ;;  %2554 = vmatpush3.msra.mxu1 %v1538_v13  ;;  %v1539_v18 = vld [vmem:[#allocation3 + $0x10] sm:$0xff]  ;;  %v1540_v31 = vld [vmem:[#allocation3 + $0x18] sm:$0xff] }
 0x318   : > { %2558 = vmatprep.subr.mxu0 %v2842_v6  ;;  %2563 = vmatprep.subr.mxu1 %v2842_v6 }
 0x38e   : > { %v1519_v14 = vpop.xlane.xlu0 %1518 }
 0x38f   : > { %2748 = vrcp.f32 %v1519_v14 }
 0x390   : > { %v1522_v16 = vpop.xlane.xlu1 %1521 }
 0x391   : > { %2750 = vrcp.f32 %v1522_v16 }
 0x392   : > { %v1525_v17 = vpop.xlane.xlu0 %1524 }
 0x393   : > { %2752 = vrcp.f32 %v1525_v17 }
 0x396   : > { %v1528_v19 = vpop.xlane.xlu0 %1527 }
 0x397   : > { %2754 = vrcp.f32 %v1528_v19 }
 0x399   : > { %v2749_v20 = vpop.eup %2748 }
 0x39a   : > { %v1533_v21 = vmul.f32 %v2749_v20, %v3137_v29 }
 0x39b   : > { %v2751_v22 = vpop.eup %2750 }
 0x39c   : > { %v1534_v23 = vmul.f32 %v2751_v22, %v2743_v38  ;;  %2551 = vmatmul.mubr.msk.f32.vlgmr.msra.gmra.mrb[4].mxu0 %vm944_vm2, %v1533_v21 }
 0x39d   : > { %v2753_v37 = vpop.eup %2752  ;;  %2559 = vmatpush3.msra.mxu0 %v1539_v18  ;;  %2560 = vmatprep.mubr.msk.f32.mxu0 %vm2841_vm0, %v2842_v6 }
 0x39e   : > { %v1535_v24 = vmul.f32 %v2753_v37, %v2745_v46  ;;  %2556 = vmatmul.mubr.msk.f32.vlgmr.msra.gmra.mrb[8].mxu1 %vm944_vm2, %v1534_v23  ;;  %2649 = vmatprep.subr.bf16.mxu0 %v2840_v3 }
 0x39f   : > { %2564 = vmatpush3.msra.mxu1 %v1540_v31  ;;  %2565 = vmatprep.mubr.msk.f32.mxu1 %vm2841_vm0, %v2842_v6 }
 0x3a0   : > { %2561 = vmatmul.mubr.msk.f32.vlgmr.msra.gmra.mrb[6].mxu0 %vm944_vm2, %v1535_v24  ;;  %2637 = vmatprep.subr.bf16.mxu1 %v2840_v3 }
 0x3a1   : > { %v2755_v25 = vpop.eup %2754  ;;  %2622 = vmatprep.mubr.msk.f32.mxu0 %vm2841_vm0, %v2842_v6 }
 0x3a2   : > { %v1536_v32 = vmul.f32 %v2755_v25, %v2747_v56 }
 0x3a4   : > { %2566 = vmatmul.mubr.msk.f32.vlgmr.msra.gmra.mrb[10].mxu1 %vm944_vm2, %v1536_v32 }
 0x3a5   : > { %2576 = vmatprep.mubr.msk.f32.mxu1 %vm2841_vm0, %v2842_v6  ;;  %2639 = vmatpush3.bf16.msra.mxu1 %v2638_v28 }
 0x3a6   : > { %2640 = vmatprep.subr.bf16.mxu1 %v2840_v3 }
 0x3a9   : > { %2642 = vmatpush3.bf16.msra.mxu1 %v2641_v60  ;;  %v2199_v60 = vld [vmem:[%s3375_s12 + $0x68] sm:$0xff] }
 0x3aa   : > { %2643 = vmatprep.subr.bf16.mxu1 %v2840_v3 }
 0x46f   : > { %v1610_v29 = vpop.f32.mrb[4].mxu0 }
 0x470   : > { %v2552_v30 = vpop.f32.mrb[5].mxu0 }
 0x471   : > { %v1683_v33 = vpop.f32.mrb[8].mxu1 }
 0x472   : > { %v2557_v35 = vpop.f32.mrb[9].mxu1 }
 0x473   : > { %v1756_v36 = vpop.f32.mrb[6].mxu0  ;;  %v2102_v35 = vld [vmem:[%s3373_s10 + $0x8] sm:$0xff] }
 0x474   : > { %v1833_v38 = vcombine.low %v1610_v29, %v1756_v36  ;;  %v1834_v39 = vcombine.high %v1610_v29, %v1756_v36  ;;  %v2562_v41 = vpop.f32.mrb[7].mxu0 }
 0x475   : > { %v2186_v41 = vld [vmem:[%s3375_s12] sm:$0xff] }
 0x476   : > { %v1841_v46 = vrot.slane %v1833_v38, %v3059_v34  ;;  %v1848_v47 = vrot.slane %v1834_v39, %v3059_v34  ;;  %v2104_v38 = vld [vmem:[%s3373_s10 + $0x18] sm:$0xff] }
 0x477   : > { %v1829_v42 = vpop.f32.mrb[10].mxu1 }
 0x478   : > { %v1849_v43 = vcombine.low %v1683_v33, %v1829_v42  ;;  %v1850_v44 = vcombine.high %v1683_v33, %v1829_v42  ;;  %v2567_v45 = vpop.f32.mrb[11].mxu1  ;;  %v2187_v42 = vld [vmem:[%s3375_s12 + $0x8] sm:$0xff] }
 0x479   : > { %v2189_v45 = vld [vmem:[%s3375_s12 + $0x18] sm:$0xff] }
 0x47a   : > { %v1857_v48 = vrot.slane %v1849_v43, %v3059_v34  ;;  %v1864_v49 = vrot.slane %v1850_v44, %v3059_v34  ;;  %v2188_v43 = vld [vmem:[%s3375_s12 + $0x10] sm:$0xff]  ;;  %v2650_v44 = vpack.c.bf16 %v2187_v42, %v2186_v41 }
 0x47c   : > { %v1865_v50 = vcombine.low %v1841_v46, %v1857_v48  ;;  %v1866_v51 = vcombine.high %v1841_v46, %v1857_v48  ;;  %v1881_v52 = vcombine.low %v1848_v47, %v1864_v49  ;;  %v1882_v53 = vcombine.high %v1848_v47, %v1864_v49  ;;  %2651 = vmatpush3.bf16.msra.mxu0 %v2650_v44  ;;  %v2190_v47 = vld [vmem:[%s3375_s12 + $0x20] sm:$0xff]  ;;  %v2191_v48 = vld [vmem:[%s3375_s12 + $0x28] sm:$0xff] }
 0x47d   : > { %v2653_v46 = vpack.c.bf16 %v2189_v45, %v2188_v43  ;;  %2652 = vmatprep.subr.bf16.mxu0 %v2840_v3  ;;  %v2656_v49 = vpack.c.bf16 %v2191_v48, %v2190_v47 }
 0x47e   : > { %v1873_v56 = vrot.slane %v1865_v50, %v3071_v40  ;;  %v1880_v57 = vrot.slane %v1866_v51, %v3071_v40  ;;  %v1889_v58 = vrot.slane %v1881_v52, %v3071_v40  ;;  %v1896_v59 = vrot.slane %v1882_v53, %v3071_v40  ;;  %v2192_v50 = vld [vmem:[%s3375_s12 + $0x30] sm:$0xff]  ;;  %v2193_v51 = vld [vmem:[%s3375_s12 + $0x38] sm:$0xff]  ;;  %v2194_v53 = vld [vmem:[%s3375_s12 + $0x40] sm:$0xff] }
 0x47f   : > { %v2659_v52 = vpack.c.bf16 %v2193_v51, %v2192_v50  ;;  %v2662_v55 = vpack.c.bf16 %v2195_v54, %v2194_v53 }
 0x480   : > { %v1901_v61 = vcombine.low %v1873_v56, %v1880_v57  ;;  %v2438_v62 = vcombine.high %v1873_v56, %v1880_v57  ;;  %v1917_v63 = vcombine.low %v1889_v58, %v1896_v59  ;;  %v2439_v0 = vcombine.high %v1889_v58, %v1896_v59  ;;  %2654 = vmatpush3.bf16.msra.mxu0 %v2653_v46  ;;  %v2196_v56 = vld [vmem:[%s3375_s12 + $0x50] sm:$0xff]  ;;  %v2197_v57 = vld [vmem:[%s3375_s12 + $0x58] sm:$0xff]  ;;  %v2198_v59 = vld [vmem:[%s3375_s12 + $0x60] sm:$0xff] }
 0x481   : > { %2655 = vmatprep.subr.bf16.mxu0 %v2840_v3  ;;  %v2665_v58 = vpack.c.bf16 %v2197_v57, %v2196_v56 }
 0x482   : > { %v1908_v1 = vrot.slane %v1901_v61, %v3059_v34  ;;  %v1916_v2 = vrot.slane %v2438_v62, %v3059_v34  ;;  %v1924_v4 = vrot.slane %v1917_v63, %v3059_v34  ;;  %v1932_v5 = vrot.slane %v2439_v0, %v3059_v34 }
 0x483   : > { %v2668_v61 = vpack.c.bf16 %v2199_v60, %v2198_v59 }
 0x484   : > { %v1934_v7 = vcombine.high %v1908_v1, %v1916_v2  ;;  %v1950_v8 = vcombine.high %v1924_v4, %v1932_v5  ;;  %v1933_v9 = vcombine.low %v1908_v1, %v1916_v2  ;;  %v1949_v10 = vcombine.low %v1924_v4, %v1932_v5  ;;  %2657 = vmatpush3.bf16.msra.mxu0 %v2656_v49  ;;  %v2442_v2 = vld [vmem:[%s3371_s8] ss:$0 sm:$0xff] }
 0x485   : > { %2658 = vmatprep.subr.bf16.mxu0 %v2840_v3  ;;  %v2443_v5 = vld [vmem:[%s3372_s9] ss:$0 sm:$0xff] }
 0x486   : > { %v1948_v11 = vrot.slane %v1934_v7, %v3071_v40  ;;  %v1964_v12 = vrot.slane %v1950_v8, %v3071_v40  ;;  %v1941_v13 = vrot.slane %v1933_v9, %v3071_v40  ;;  %v1957_v14 = vrot.slane %v1949_v10, %v3071_v40  ;;  %v2440_v40 = vld [vmem:[%s3370_s7] ss:$0 sm:$0xff]  ;;  %v2201_v9 = vld [vmem:[%s3375_s12 + $0x78] sm:$0xff] }
 0x488   : > { %v1967_v16 = vcombine.low %v1948_v11, %v1964_v12  ;;  %v1966_v17 = vcombine.high %v1941_v13, %v1957_v14  ;;  %v1968_v19 = vcombine.high %v1948_v11, %v1964_v12  ;;  %v1965_v20 = vcombine.low %v1941_v13, %v1957_v14  ;;  %2660 = vmatpush3.bf16.msra.mxu0 %v2659_v52  ;;  %v2444_v11 = vld [vmem:[%s3374_s11] ss:$0 sm:$0xff] }
 0x489   : > { %2661 = vmatprep.subr.bf16.mxu0 %v2840_v3 }
 0x48a   : > { %1974 = vrot.lane.b32.xlu0 %v1967_v16, %s2849_s29  ;;  %1970 = vrot.lane.b32.xlu1 %v1966_v17, %s2850_s20  ;;  %v2446_v17 = vld [vmem:[%s3376_s13] ss:$0 sm:$0xff]  ;;  %s2311_s29 = scalar_lea.sflag [#allocation5], %s545_s17  ;;  %s2760_s20 = scalar_lea.vmem %s3317_s23, 128 }
 0x48b   : > { %p2761_p12 = scmp.ne.s32.totalorder %s3317_s23, %s2760_s20 }
 0x48c   : > { %2663 = vmatpush3.bf16.msra.mxu0 %v2662_v55 }
 0x48d   : > { %2664 = vmatprep.subr.bf16.mxu0 %v2840_v3  ;;  %p2762_p13 = pnand %p2761_p12, %p2978_p4 }
 0x48e   : > { %1978 = vrot.lane.b32.xlu1 %v1968_v19, %s2851_s4  ;;  %s2766_s4 = scalar_lea.vmem %s2765_s30, 256 }
 0x48f   : > { %p2763_p0 = pneg %p2762_p13  ;;  %p2768_p2 = scmp.lt.s32.totalorder %s2766_s4, %s2760_s20 }
 0x490   : > { %2666 = vmatpush3.bf16.msra.mxu0 %v2665_v58 }
 0x491   : > { %2667 = vmatprep.subr.bf16.mxu0 %v2840_v3  ;;  %p2769_p3 = por %p2768_p2, %p2767_p1 }
 0x493   : > { %p2770_p5 = pnand %p2769_p3, %p2763_p0 }
 0x494   : > { %2669 = vmatpush3.bf16.msra.mxu0 %v2668_v61 }
 0x495   : > { %2670 = vmatprep.subr.bf16.mxu0 %v2840_v3 }
 0x4fc   : > { %v1971_v34 = vpop.permute.xlu1 %1970  ;;  %v1975_v21 = vpop.permute.xlu0 %1974 }
 0x4fd   : > { %v1981_v22 = vsel %vm944_vm2, %v1965_v20, %v1971_v34 }
 0x4fe   : > { %v1983_v18 = vsel %vm1982_vm3, %v1981_v22, %v1975_v21 }
 0x500   : > { %v1979_v23 = vpop.permute.xlu1 %1978 }
 0x501   : > { %v1985_v37 = vsel %vm1984_vm4, %v1983_v18, %v1979_v23 }
 0x502   : > { %2577 = vmatmul.mubr.msk.f32.vlgmr.msra.gmra.mrb[12].mxu1 %vm576_vm1, %v1985_v37 }
 0x503   : > { %2587 = vmatprep.mubr.msk.f32.mxu1 %vm2841_vm0, %v2842_v6  ;;  %v2101_v6 = vld [vmem:[%s3373_s10] sm:$0xff] }
 0x504   : > { %v2644_v36 = vpack.c.bf16 %v2102_v35, %v2101_v6 }
 0x506   : > { %2645 = vmatpush3.bf16.msra.mxu1 %v2644_v36 }
 0x507   : > { %2646 = vmatprep.subr.bf16.mxu1 %v2840_v3  ;;  %v2200_v3 = vld [vmem:[%s3375_s12 + $0x70] sm:$0xff] }
 0x508   : > { %v2671_v10 = vpack.c.bf16 %v2201_v9, %v2200_v3 }
 0x50a   : > { %2672 = vmatpush3.bf16.msra.mxu0 %v2671_v10 }
 0x5d5   : > { %v2066_v24 = vpop.f32.mrb[12].mxu1 }
 0x5d6   : > { %v2067_v31 = vadd.f32 %v2440_v40, %v2066_v24  ;;  %v2578_v25 = vpop.f32.mrb[13].mxu1 }
 0x5d8   : > { %v2070_v32 = vadd.f32 %v2067_v31, %v3037_v15  ;;  %v2103_v15 = vld [vmem:[%s3373_s10 + $0x10] sm:$0xff] }
 0x5d9   : > { %v2647_v39 = vpack.c.bf16 %v2104_v38, %v2103_v15 }
 0x5da   : > { %v2073_v26 = vsel %vm576_vm1, %v2070_v32, 0.0 }
 0x5db   : > { %2074 = vadd.xlane.f32.xlu1 %v2073_v26  ;;  %2648 = vmatpush3.bf16.msra.mxu1 %v2647_v39 }
 0x668   : > { %v2075_v27 = vpop.xlane.xlu1 %2074 }
 0x669   : > { %v2077_v28 = vmul.f32 0.03125, %v2075_v27  ;;  %v2447_v27 = vld [vmem:[%s3377_s14] ss:$0 sm:$0xff] }
 0x66b   : > { %v2078_v29 = vsub.f32 %v2070_v32, %v2077_v28 }
 0x66d   : > { %v2079_v30 = vmul.f32 %v2078_v29, %v2078_v29 }
 0x66f   : > { %v2080_v33 = vsel %vm576_vm1, %v2079_v30, 0.0 }
 0x670   : > { %2081 = vadd.xlane.f32.xlu0 %v2080_v33 }
 0x6fd   : > { %v2082_v62 = vpop.xlane.xlu0 %2081 }
 0x6fe   : > { %v2083_v63 = vmul.f32 0.03125, %v2082_v62 }
 0x700   : > { %v2084_v0 = vadd.f32 1e-05, %v2083_v63 }
 0x702   : > { %2756 = vrsqrt.f32 %v2084_v0 }
 0x70c   : > { %v2757_v1 = vpop.eup %2756 }
 0x70d   : > { %v2086_v4 = vmul.f32 %v2757_v1, %v2078_v29  ;;  %v2448_v29 = vld [vmem:[%s3378_s15] ss:$0 sm:$0xff] }
 0x70f   : > { %v2093_v7 = vmul.f32 %v2442_v2, %v2086_v4 }
 0x711   : > { %v2100_v8 = vadd.f32 %v2443_v5, %v2093_v7 }
 0x713   : > { %2588 = vmatmul.mubr.msk.f32.vlgmr.msra.gmra.mrb[14].mxu1 %vm576_vm1, %v2100_v8 }
 0x7e6   : > { %v2181_v12 = vpop.f32.mrb[14].mxu1 }
 0x7e7   : > { %v2182_v13 = vadd.f32 %v2444_v11, %v2181_v12  ;;  %v2589_v14 = vpop.f32.mrb[15].mxu1 }
 0x7e9   : > { %v2185_v16 = vmax.f32 %v2182_v13, 0.0 }
 0x7eb   : > { %2623 = vmatmul.mubr.f32.vlgmr.msra.gmra.mrb[8].mxu0 %v2185_v16 }
 0x8be   : > { %v2275_v19 = vpop.f32.mrb[8].mxu0 }
 0x8bf   : > { %v2276_v20 = vadd.f32 %v2446_v17, %v2275_v19  ;;  %v2624_v34 = vpop.f32.mrb[9].mxu0 }
 0x8c1   : > { %v2279_v21 = vadd.f32 %v2276_v20, %v2100_v8 }
 0x8c3   : > { %v2282_v22 = vsel %vm576_vm1, %v2279_v21, 0.0 }
 0x8c4   : > { %2283 = vadd.xlane.f32.xlu0 %v2282_v22 }
 0x951   : > { %v2284_v23 = vpop.xlane.xlu0 %2283 }
 0x952   : > { %v2285_v18 = vmul.f32 0.03125, %v2284_v23 }
 0x954   : > { %v2286_v37 = vsub.f32 %v2279_v21, %v2285_v18 }
 0x956   : > { %v2287_v40 = vmul.f32 %v2286_v37, %v2286_v37 }
 0x958   : > { %v2288_v24 = vsel %vm576_vm1, %v2287_v40, 0.0 }
 0x959   : > { %2289 = vadd.xlane.f32.xlu1 %v2288_v24 }
 0x9e6   : > { %v2290_v31 = vpop.xlane.xlu1 %2289 }
 0x9e7   : > { %v2291_v25 = vmul.f32 0.03125, %v2290_v31 }
 0x9e9   : > { %v2292_v32 = vadd.f32 1e-05, %v2291_v25 }
 0x9eb   : > { %2758 = vrsqrt.f32 %v2292_v32 }
 0x9f5   : > { %v2759_v26 = vpop.eup %2758 }
 0x9f6   : > { %v2294_v28 = vmul.f32 %v2759_v26, %v2286_v37 }
 0x9f8   : > { %v2301_v30 = vmul.f32 %v2447_v27, %v2294_v28 }
 0x9fa   : > { %v2308_v33 = vadd.f32 %v2448_v29, %v2301_v30 }
 0x9fc   : > { %2309 = vst.msk [vmem:[%s547_s27] sm:$0xff] %vm576_vm1, %v2308_v33 }
 0x9fd   : > { %2773 = shalt.err (!%p2770_p5)
}
 0x9fe   : > { %s2774_s17 = scalar_lea.hbm %s3315_s1, 128  ;;  %s2778_s27 = scalar_lea.hbm %s3379_s16, 256 }
 0x9ff   : > { %p2775_p6 = scmp.ne.s32.totalorder %s3315_s1, %s2774_s17  ;;  %p2779_p10 = scmp.lt.u32.totalorder %s3315_s1, %s3379_s16 }
 0xa00   : > { %p2780_p11 = scmp.lt.u32.totalorder %s2778_s27, %s2774_s17  ;;  %p2782_p13 = scmp.lt.u32.totalorder %s2774_s17, %s3315_s1 }
 0xa01   : > { %p2776_p7 = pnand %p2775_p6, %p2978_p4 }
 0xa02   : > { %p2781_p12 = por %p2780_p11, %p2779_p10 }
 0xa03   : > { %p2777_p9 = pneg %p2776_p7 }
 0xa04   : > { %p2783_p0 = por %p2782_p13, %p2781_p12 }
 0xa06   : > { %p2784_p1 = pnand %p2783_p0, %p2777_p9 }
 0xa08   : > { %2787 = shalt.err (!%p2784_p1)
}
 0xa09   : > { %2673 = dma.vmem_to_hbm [thread:$0]  (%p2978_p4), %s3317_s23, 128, %s3315_s1, %s2311_s29  }
 0xa0a PF: > { %s3397_s20 = sld [smem:[#allocation7_spill]]  ;;  %p2679_p2 = scmp.ge.s32.totalorder %s2838_s26, 2 }
 0xa0c   : > { %p2676_p3 = pnand %p2679_p2, %p2985_p8 }
 0xa10   : > { %s2337_s24 = sand.u32 1, %s3397_s20  }
 0xa11   : > { %s2338_s30 = scalar_lea.sflag [#allocation5], %s2337_s24 }
 0xa12   : > { %2813 = dma.done.wait (!%p2676_p3), %s2338_s30, 128  }
 0xa13   : > { %2815 = vsyncadd (!%p2676_p3), %s2338_s30, 4294967168  ;;  %s29_s26 = sadd.s32 1, %s2838_s26   ;;  %s3398_s4 = sld [smem:[#allocation8_spill]] }
 0xa14   : > { %p26_p5 = scmp.ge.s32.totalorder %s29_s26, 4   ;;  %s3399_s23 = sld [smem:[#allocation11_spill]] }
 0xa15   : > { %s3400_s24 = sld [smem:[#allocation9_spill]]  ;;  %s3401_s25 = sld [smem:[#allocation10_spill]] }
 0xa16   : > { %s3402_s21 = smov %s2822_s22  ;;  %28 = sbr.rel (!%p26_p5) target bundleno = 8 (0x8), region = 126 }
 0xa19   : > { %s3403_s22 = smov %s3398_s4 }
 0xa1d   :  { %2343 = vsyncpa [#allocation5], 1 }
 0xa1e   :  { %2345 = vsyncpa [#allocation5 + $0x1], 1 }

</bundles_post_ra>
